<compile_context>
chip_gen: v6e
topology: v6e:2x2x1
jax: 0.10.0
libtpu: 0.0.40
codegen_flags: <defaults>
</compile_context>

<pallas_src>
import jax
import jax.numpy as jnp
from jax.experimental import pallas as pl
from jax.experimental.pallas import tpu as pltpu


# ---------------------------------------------------------------------------
# Flat parameter layout (all f32; weights stored row-major as (in, out), i.e.
# w[k, j] = weight from input feature k to output feature j, matching
# PyTorch's  y = x @ W_pt.T + b  semantics).
# ---------------------------------------------------------------------------
_PARAM_SIZES = (3 * 6, 6, 6 * 6, 6, 6 * 6, 6, 6 * 3, 3, 3, 3, 3 * 1, 1)
_offs, _o = [], 0
for _s in _PARAM_SIZES:
    _offs.append(_o)
    _o += _s
(W1_OFF, B1_OFF, W2_OFF, B2_OFF, W3_OFF, B3_OFF,
 W4_OFF, B4_OFF, GAMMA_OFF, BETA_OFF, W5_OFF, B5_OFF) = _offs
N_PARAMS = _o  # 139

LANES = 128          # lane width (batch minor dim)
R_MAX = 1024         # max sublane rows per tile -> 128K batch elems / tile


def _round_up(n, m):
    return ((n + m - 1) // m) * m


def _cdiv(a, b):
    return -(-a // b)


def _linear_tanh(p_ref, rows, w_off, b_off, fin, fout):
    """rows: list of `fin` arrays of shape (R, 128) -> list of `fout` (R, 128).

    Unrolled scalar-weight FMA chain on the VPU (batch on sublanes x lanes);
    tanh on the EUP. Each SMEM scalar is read exactly once.
    """
    out_rows = []
    for j in range(fout):
        acc = rows[0] * p_ref[w_off + j] + p_ref[b_off + j]
        for k in range(1, fin):
            acc = acc + rows[k] * p_ref[w_off + k * fout + j]
        out_rows.append(jnp.tanh(acc))
    return out_rows


def _mlp_kernel(p_ref, x_ref, o_ref):
    # p_ref: (N_PARAMS,) f32 in SMEM
    # x_ref: (3, R, 128) f32 in VMEM  (feature, batch-rows, batch-lanes)
    # o_ref: (R, 128)    f32 in VMEM  (lane- and sublane-dense output)
    h = [x_ref[k] for k in range(3)]

    h = _linear_tanh(p_ref, h, W1_OFF, B1_OFF, 3, 6)
    h = _linear_tanh(p_ref, h, W2_OFF, B2_OFF, 6, 6)
    h = _linear_tanh(p_ref, h, W3_OFF, B3_OFF, 6, 6)
    h = _linear_tanh(p_ref, h, W4_OFF, B4_OFF, 6, 3)

    # LayerNorm(3): explicit 3-"row" reduction across feature arrays (pure VPU,
    # no cross-lane XLU work), biased variance, eps=1e-5 (PyTorch default).
    h0, h1, h2 = h
    mu = (h0 + h1 + h2) * (1.0 / 3.0)
    d0, d1, d2 = h0 - mu, h1 - mu, h2 - mu
    var = (d0 * d0 + d1 * d1 + d2 * d2) * (1.0 / 3.0)
    inv = jax.lax.rsqrt(var + 1e-5)                       # EUP
    n0 = d0 * inv * p_ref[GAMMA_OFF + 0] + p_ref[BETA_OFF + 0]
    n1 = d1 * inv * p_ref[GAMMA_OFF + 1] + p_ref[BETA_OFF + 1]
    n2 = d2 * inv * p_ref[GAMMA_OFF + 2] + p_ref[BETA_OFF + 2]

    # Final Linear(3, 1): three scalar MACs, full-width dense store.
    o_ref[...] = (n0 * p_ref[W5_OFF + 0]
                  + n1 * p_ref[W5_OFF + 1]
                  + n2 * p_ref[W5_OFF + 2]
                  + p_ref[B5_OFF])


def _flatten_params(params):
    return jnp.concatenate(
        [jnp.asarray(a, jnp.float32).reshape(-1) for a in params])


def _tile_plan(batch, r_max=R_MAX):
    """Pick (rows-per-tile R, grid steps G) for a batch of `batch` samples.

    Ensures: R is a multiple of 8 (or equals the total row count when tiny),
    >=2 grid steps whenever possible (v7x megacore), and the total host-side
    padding stays small (a few sublane rows per grid step at most).
    """
    rtot = _cdiv(batch, LANES)           # 128-wide batch rows needed
    if rtot <= 8:
        return rtot, 1
    g = max(2, _cdiv(rtot, r_max))
    r = min(_round_up(_cdiv(rtot, g), 8), r_max)
    return r, _cdiv(rtot, r)


def new_model_forward(x, params, r_max=R_MAX):
    """x: (B, 3) float32 -> (B, 1) float32."""
    B = x.shape[0]
    p_flat = _flatten_params(params)
    assert p_flat.shape == (N_PARAMS,)

    R, G = _tile_plan(B, r_max)
    Bp = G * R * LANES                    # padded batch (<= ~1.5% overhead)

    xp = jnp.asarray(x, jnp.float32)
    if Bp != B:
        xp = jnp.pad(xp, ((0, Bp - B), (0, 0)))
    # (Bp, 3) -> (3, Bp) -> (3, rows, 128); pad+transpose+reshape fuse in XLA.
    xT = xp.T.reshape(3, G * R, LANES)

    out = pl.pallas_call(
        _mlp_kernel,
        out_shape=jax.ShapeDtypeStruct((G * R, LANES), jnp.float32),
        grid=(G,),
        in_specs=[
            pl.BlockSpec(memory_space=pltpu.MemorySpace.SMEM),      # flat params
            pl.BlockSpec((3, R, LANES), lambda i: (0, i, 0)),       # batch tile
        ],
        out_specs=pl.BlockSpec((R, LANES), lambda i: (i, 0)),
        compiler_params=pltpu.CompilerParams(
            dimension_semantics=("parallel",),
            vmem_limit_bytes=32 * 1024 * 1024,
        ),
    )(p_flat, xT)

    return out.reshape(Bp)[:B].reshape(B, 1)


# ---------------------------------------------------------------------------
# Reference + deterministic synthetic parameters
# ---------------------------------------------------------------------------
def init_params(key):
    """Synthetic parameters with PyTorch Linear shapes (stored as (in, out))."""
    def linear(key, fan_in, fan_out):
        kw, kb = jax.random.split(key)
        bound = 1.0 / (fan_in ** 0.5)
        w = jax.random.uniform(kw, (fan_in, fan_out), jnp.float32, -bound, bound)
        b = jax.random.uniform(kb, (1, fan_out), jnp.float32, -bound, bound)
        return w, b

    keys = jax.random.split(key, 5)
    w1, b1 = linear(keys[0], 3, 6)
    w2, b2 = linear(keys[1], 6, 6)
    w3, b3 = linear(keys[2], 6, 6)
    w4, b4 = linear(keys[3], 6, 3)
    gamma = jnp.ones((1, 3), jnp.float32)    # LayerNorm weight
    beta = jnp.zeros((1, 3), jnp.float32)    # LayerNorm bias
    w5, b5 = linear(keys[4], 3, 1)
    return (w1, b1, w2, b2, w3, b3, w4, b4, gamma, beta, w5, b5)


def reference_forward(x, params):
    (w1, b1, w2, b2, w3, b3, w4, b4, gamma, beta, w5, b5) = params
    h = jnp.tanh(x @ w1 + b1)
    h = jnp.tanh(h @ w2 + b2)
    h = jnp.tanh(h @ w3 + b3)
    h = jnp.tanh(h @ w4 + b4)
    mu = jnp.mean(h, axis=-1, keepdims=True)
    var = jnp.mean((h - mu) ** 2, axis=-1, keepdims=True)
    hn = (h - mu) / jnp.sqrt(var + 1e-5) * gamma + beta
    return hn @ w5 + b5


if __name__ == "__main__":
    key = jax.random.PRNGKey(0)
    kx, kp = jax.random.split(key)
    params = init_params(kp)

    # Small single-tile case and a multi-tile case (exercises the parallel
    # grid, adaptive tile-row choice and padding / un-padding path).
    for B in (8, 2500):
        x = jax.random.normal(jax.random.fold_in(kx, B), (B, 3), jnp.float32)
        out = jax.block_until_ready(new_model_forward(x, params))
        ref = reference_forward(x, params)
        assert out.shape == (B, 1)
        assert jnp.allclose(out, ref, atol=1e-5, rtol=1e-4), (
            B, float(jnp.max(jnp.abs(out - ref))))

    print("KERNEL_OK")
</pallas_src>

<mosaic_0001>
module attributes {stable_mosaic.version = 11 : i64} {
  func.func @_mlp_kernel(%arg0: i32, %arg1: memref<139xf32, #tpu.memory_space<smem>>, %arg2: memref<3x1x128xf32, #tpu.memory_space<vmem>>, %arg3: memref<1x128xf32, #tpu.memory_space<vmem>>) attributes {dimension_semantics = [#tpu.dimension_semantics<parallel>], iteration_bounds = array<i64: 1>, scalar_prefetch = 0 : i64, scratch_operands = 0 : i64, tpu.core_type = #tpu.core_type<tc>, window_params = [{transform_indices = @transform_0, window_bounds = array<i64: 139>}, {transform_indices = @transform_1, window_bounds = array<i64: 3, 1, 128>}, {transform_indices = @transform_2, window_bounds = array<i64: 1, 128>}]} {
    %c0 = arith.constant 0 : index
    %c0_0 = arith.constant 0 : index
    %c0_1 = arith.constant 0 : index
    %0 = vector.load %arg2[%c0, %c0_0, %c0_1] : memref<3x1x128xf32, #tpu.memory_space<vmem>>, vector<1x1x128xf32>
    %1 = vector.shape_cast %0 : vector<1x1x128xf32> to vector<1x128xf32>
    %c1 = arith.constant 1 : index
    %c0_2 = arith.constant 0 : index
    %c0_3 = arith.constant 0 : index
    %2 = vector.load %arg2[%c1, %c0_2, %c0_3] : memref<3x1x128xf32, #tpu.memory_space<vmem>>, vector<1x1x128xf32>
    %3 = vector.shape_cast %2 : vector<1x1x128xf32> to vector<1x128xf32>
    %c2 = arith.constant 2 : index
    %c0_4 = arith.constant 0 : index
    %c0_5 = arith.constant 0 : index
    %4 = vector.load %arg2[%c2, %c0_4, %c0_5] : memref<3x1x128xf32, #tpu.memory_space<vmem>>, vector<1x1x128xf32>
    %5 = vector.shape_cast %4 : vector<1x1x128xf32> to vector<1x128xf32>
    %c0_6 = arith.constant 0 : index
    %6 = memref.load %arg1[%c0_6] : memref<139xf32, #tpu.memory_space<smem>>
    %7 = vector.broadcast %6 : f32 to vector<1x128xf32>
    %8 = arith.mulf %1, %7 : vector<1x128xf32>
    %c18 = arith.constant 18 : index
    %9 = memref.load %arg1[%c18] : memref<139xf32, #tpu.memory_space<smem>>
    %10 = vector.broadcast %9 : f32 to vector<1x128xf32>
    %11 = arith.addf %8, %10 : vector<1x128xf32>
    %c6 = arith.constant 6 : index
    %12 = memref.load %arg1[%c6] : memref<139xf32, #tpu.memory_space<smem>>
    %13 = vector.broadcast %12 : f32 to vector<1x128xf32>
    %14 = arith.mulf %3, %13 : vector<1x128xf32>
    %15 = arith.addf %11, %14 : vector<1x128xf32>
    %c12 = arith.constant 12 : index
    %16 = memref.load %arg1[%c12] : memref<139xf32, #tpu.memory_space<smem>>
    %17 = vector.broadcast %16 : f32 to vector<1x128xf32>
    %18 = arith.mulf %5, %17 : vector<1x128xf32>
    %19 = arith.addf %15, %18 : vector<1x128xf32>
    %20 = math.tanh %19 : vector<1x128xf32>
    %c1_7 = arith.constant 1 : index
    %21 = memref.load %arg1[%c1_7] : memref<139xf32, #tpu.memory_space<smem>>
    %22 = vector.broadcast %21 : f32 to vector<1x128xf32>
    %23 = arith.mulf %1, %22 : vector<1x128xf32>
    %c19 = arith.constant 19 : index
    %24 = memref.load %arg1[%c19] : memref<139xf32, #tpu.memory_space<smem>>
    %25 = vector.broadcast %24 : f32 to vector<1x128xf32>
    %26 = arith.addf %23, %25 : vector<1x128xf32>
    %c7 = arith.constant 7 : index
    %27 = memref.load %arg1[%c7] : memref<139xf32, #tpu.memory_space<smem>>
    %28 = vector.broadcast %27 : f32 to vector<1x128xf32>
    %29 = arith.mulf %3, %28 : vector<1x128xf32>
    %30 = arith.addf %26, %29 : vector<1x128xf32>
    %c13 = arith.constant 13 : index
    %31 = memref.load %arg1[%c13] : memref<139xf32, #tpu.memory_space<smem>>
    %32 = vector.broadcast %31 : f32 to vector<1x128xf32>
    %33 = arith.mulf %5, %32 : vector<1x128xf32>
    %34 = arith.addf %30, %33 : vector<1x128xf32>
    %35 = math.tanh %34 : vector<1x128xf32>
    %c2_8 = arith.constant 2 : index
    %36 = memref.load %arg1[%c2_8] : memref<139xf32, #tpu.memory_space<smem>>
    %37 = vector.broadcast %36 : f32 to vector<1x128xf32>
    %38 = arith.mulf %1, %37 : vector<1x128xf32>
    %c20 = arith.constant 20 : index
    %39 = memref.load %arg1[%c20] : memref<139xf32, #tpu.memory_space<smem>>
    %40 = vector.broadcast %39 : f32 to vector<1x128xf32>
    %41 = arith.addf %38, %40 : vector<1x128xf32>
    %c8 = arith.constant 8 : index
    %42 = memref.load %arg1[%c8] : memref<139xf32, #tpu.memory_space<smem>>
    %43 = vector.broadcast %42 : f32 to vector<1x128xf32>
    %44 = arith.mulf %3, %43 : vector<1x128xf32>
    %45 = arith.addf %41, %44 : vector<1x128xf32>
    %c14 = arith.constant 14 : index
    %46 = memref.load %arg1[%c14] : memref<139xf32, #tpu.memory_space<smem>>
    %47 = vector.broadcast %46 : f32 to vector<1x128xf32>
    %48 = arith.mulf %5, %47 : vector<1x128xf32>
    %49 = arith.addf %45, %48 : vector<1x128xf32>
    %50 = math.tanh %49 : vector<1x128xf32>
    %c3 = arith.constant 3 : index
    %51 = memref.load %arg1[%c3] : memref<139xf32, #tpu.memory_space<smem>>
    %52 = vector.broadcast %51 : f32 to vector<1x128xf32>
    %53 = arith.mulf %1, %52 : vector<1x128xf32>
    %c21 = arith.constant 21 : index
    %54 = memref.load %arg1[%c21] : memref<139xf32, #tpu.memory_space<smem>>
    %55 = vector.broadcast %54 : f32 to vector<1x128xf32>
    %56 = arith.addf %53, %55 : vector<1x128xf32>
    %c9 = arith.constant 9 : index
    %57 = memref.load %arg1[%c9] : memref<139xf32, #tpu.memory_space<smem>>
    %58 = vector.broadcast %57 : f32 to vector<1x128xf32>
    %59 = arith.mulf %3, %58 : vector<1x128xf32>
    %60 = arith.addf %56, %59 : vector<1x128xf32>
    %c15 = arith.constant 15 : index
    %61 = memref.load %arg1[%c15] : memref<139xf32, #tpu.memory_space<smem>>
    %62 = vector.broadcast %61 : f32 to vector<1x128xf32>
    %63 = arith.mulf %5, %62 : vector<1x128xf32>
    %64 = arith.addf %60, %63 : vector<1x128xf32>
    %65 = math.tanh %64 : vector<1x128xf32>
    %c4 = arith.constant 4 : index
    %66 = memref.load %arg1[%c4] : memref<139xf32, #tpu.memory_space<smem>>
    %67 = vector.broadcast %66 : f32 to vector<1x128xf32>
    %68 = arith.mulf %1, %67 : vector<1x128xf32>
    %c22 = arith.constant 22 : index
    %69 = memref.load %arg1[%c22] : memref<139xf32, #tpu.memory_space<smem>>
    %70 = vector.broadcast %69 : f32 to vector<1x128xf32>
    %71 = arith.addf %68, %70 : vector<1x128xf32>
    %c10 = arith.constant 10 : index
    %72 = memref.load %arg1[%c10] : memref<139xf32, #tpu.memory_space<smem>>
    %73 = vector.broadcast %72 : f32 to vector<1x128xf32>
    %74 = arith.mulf %3, %73 : vector<1x128xf32>
    %75 = arith.addf %71, %74 : vector<1x128xf32>
    %c16 = arith.constant 16 : index
    %76 = memref.load %arg1[%c16] : memref<139xf32, #tpu.memory_space<smem>>
    %77 = vector.broadcast %76 : f32 to vector<1x128xf32>
    %78 = arith.mulf %5, %77 : vector<1x128xf32>
    %79 = arith.addf %75, %78 : vector<1x128xf32>
    %80 = math.tanh %79 : vector<1x128xf32>
    %c5 = arith.constant 5 : index
    %81 = memref.load %arg1[%c5] : memref<139xf32, #tpu.memory_space<smem>>
    %82 = vector.broadcast %81 : f32 to vector<1x128xf32>
    %83 = arith.mulf %1, %82 : vector<1x128xf32>
    %c23 = arith.constant 23 : index
    %84 = memref.load %arg1[%c23] : memref<139xf32, #tpu.memory_space<smem>>
    %85 = vector.broadcast %84 : f32 to vector<1x128xf32>
    %86 = arith.addf %83, %85 : vector<1x128xf32>
    %c11 = arith.constant 11 : index
    %87 = memref.load %arg1[%c11] : memref<139xf32, #tpu.memory_space<smem>>
    %88 = vector.broadcast %87 : f32 to vector<1x128xf32>
    %89 = arith.mulf %3, %88 : vector<1x128xf32>
    %90 = arith.addf %86, %89 : vector<1x128xf32>
    %c17 = arith.constant 17 : index
    %91 = memref.load %arg1[%c17] : memref<139xf32, #tpu.memory_space<smem>>
    %92 = vector.broadcast %91 : f32 to vector<1x128xf32>
    %93 = arith.mulf %5, %92 : vector<1x128xf32>
    %94 = arith.addf %90, %93 : vector<1x128xf32>
    %95 = math.tanh %94 : vector<1x128xf32>
    %c24 = arith.constant 24 : index
    %96 = memref.load %arg1[%c24] : memref<139xf32, #tpu.memory_space<smem>>
    %97 = vector.broadcast %96 : f32 to vector<1x128xf32>
    %98 = arith.mulf %20, %97 : vector<1x128xf32>
    %c60 = arith.constant 60 : index
    %99 = memref.load %arg1[%c60] : memref<139xf32, #tpu.memory_space<smem>>
    %100 = vector.broadcast %99 : f32 to vector<1x128xf32>
    %101 = arith.addf %98, %100 : vector<1x128xf32>
    %c30 = arith.constant 30 : index
    %102 = memref.load %arg1[%c30] : memref<139xf32, #tpu.memory_space<smem>>
    %103 = vector.broadcast %102 : f32 to vector<1x128xf32>
    %104 = arith.mulf %35, %103 : vector<1x128xf32>
    %105 = arith.addf %101, %104 : vector<1x128xf32>
    %c36 = arith.constant 36 : index
    %106 = memref.load %arg1[%c36] : memref<139xf32, #tpu.memory_space<smem>>
    %107 = vector.broadcast %106 : f32 to vector<1x128xf32>
    %108 = arith.mulf %50, %107 : vector<1x128xf32>
    %109 = arith.addf %105, %108 : vector<1x128xf32>
    %c42 = arith.constant 42 : index
    %110 = memref.load %arg1[%c42] : memref<139xf32, #tpu.memory_space<smem>>
    %111 = vector.broadcast %110 : f32 to vector<1x128xf32>
    %112 = arith.mulf %65, %111 : vector<1x128xf32>
    %113 = arith.addf %109, %112 : vector<1x128xf32>
    %c48 = arith.constant 48 : index
    %114 = memref.load %arg1[%c48] : memref<139xf32, #tpu.memory_space<smem>>
    %115 = vector.broadcast %114 : f32 to vector<1x128xf32>
    %116 = arith.mulf %80, %115 : vector<1x128xf32>
    %117 = arith.addf %113, %116 : vector<1x128xf32>
    %c54 = arith.constant 54 : index
    %118 = memref.load %arg1[%c54] : memref<139xf32, #tpu.memory_space<smem>>
    %119 = vector.broadcast %118 : f32 to vector<1x128xf32>
    %120 = arith.mulf %95, %119 : vector<1x128xf32>
    %121 = arith.addf %117, %120 : vector<1x128xf32>
    %122 = math.tanh %121 : vector<1x128xf32>
    %c25 = arith.constant 25 : index
    %123 = memref.load %arg1[%c25] : memref<139xf32, #tpu.memory_space<smem>>
    %124 = vector.broadcast %123 : f32 to vector<1x128xf32>
    %125 = arith.mulf %20, %124 : vector<1x128xf32>
    %c61 = arith.constant 61 : index
    %126 = memref.load %arg1[%c61] : memref<139xf32, #tpu.memory_space<smem>>
    %127 = vector.broadcast %126 : f32 to vector<1x128xf32>
    %128 = arith.addf %125, %127 : vector<1x128xf32>
    %c31 = arith.constant 31 : index
    %129 = memref.load %arg1[%c31] : memref<139xf32, #tpu.memory_space<smem>>
    %130 = vector.broadcast %129 : f32 to vector<1x128xf32>
    %131 = arith.mulf %35, %130 : vector<1x128xf32>
    %132 = arith.addf %128, %131 : vector<1x128xf32>
    %c37 = arith.constant 37 : index
    %133 = memref.load %arg1[%c37] : memref<139xf32, #tpu.memory_space<smem>>
    %134 = vector.broadcast %133 : f32 to vector<1x128xf32>
    %135 = arith.mulf %50, %134 : vector<1x128xf32>
    %136 = arith.addf %132, %135 : vector<1x128xf32>
    %c43 = arith.constant 43 : index
    %137 = memref.load %arg1[%c43] : memref<139xf32, #tpu.memory_space<smem>>
    %138 = vector.broadcast %137 : f32 to vector<1x128xf32>
    %139 = arith.mulf %65, %138 : vector<1x128xf32>
    %140 = arith.addf %136, %139 : vector<1x128xf32>
    %c49 = arith.constant 49 : index
    %141 = memref.load %arg1[%c49] : memref<139xf32, #tpu.memory_space<smem>>
    %142 = vector.broadcast %141 : f32 to vector<1x128xf32>
    %143 = arith.mulf %80, %142 : vector<1x128xf32>
    %144 = arith.addf %140, %143 : vector<1x128xf32>
    %c55 = arith.constant 55 : index
    %145 = memref.load %arg1[%c55] : memref<139xf32, #tpu.memory_space<smem>>
    %146 = vector.broadcast %145 : f32 to vector<1x128xf32>
    %147 = arith.mulf %95, %146 : vector<1x128xf32>
    %148 = arith.addf %144, %147 : vector<1x128xf32>
    %149 = math.tanh %148 : vector<1x128xf32>
    %c26 = arith.constant 26 : index
    %150 = memref.load %arg1[%c26] : memref<139xf32, #tpu.memory_space<smem>>
    %151 = vector.broadcast %150 : f32 to vector<1x128xf32>
    %152 = arith.mulf %20, %151 : vector<1x128xf32>
    %c62 = arith.constant 62 : index
    %153 = memref.load %arg1[%c62] : memref<139xf32, #tpu.memory_space<smem>>
    %154 = vector.broadcast %153 : f32 to vector<1x128xf32>
    %155 = arith.addf %152, %154 : vector<1x128xf32>
    %c32 = arith.constant 32 : index
    %156 = memref.load %arg1[%c32] : memref<139xf32, #tpu.memory_space<smem>>
    %157 = vector.broadcast %156 : f32 to vector<1x128xf32>
    %158 = arith.mulf %35, %157 : vector<1x128xf32>
    %159 = arith.addf %155, %158 : vector<1x128xf32>
    %c38 = arith.constant 38 : index
    %160 = memref.load %arg1[%c38] : memref<139xf32, #tpu.memory_space<smem>>
    %161 = vector.broadcast %160 : f32 to vector<1x128xf32>
    %162 = arith.mulf %50, %161 : vector<1x128xf32>
    %163 = arith.addf %159, %162 : vector<1x128xf32>
    %c44 = arith.constant 44 : index
    %164 = memref.load %arg1[%c44] : memref<139xf32, #tpu.memory_space<smem>>
    %165 = vector.broadcast %164 : f32 to vector<1x128xf32>
    %166 = arith.mulf %65, %165 : vector<1x128xf32>
    %167 = arith.addf %163, %166 : vector<1x128xf32>
    %c50 = arith.constant 50 : index
    %168 = memref.load %arg1[%c50] : memref<139xf32, #tpu.memory_space<smem>>
    %169 = vector.broadcast %168 : f32 to vector<1x128xf32>
    %170 = arith.mulf %80, %169 : vector<1x128xf32>
    %171 = arith.addf %167, %170 : vector<1x128xf32>
    %c56 = arith.constant 56 : index
    %172 = memref.load %arg1[%c56] : memref<139xf32, #tpu.memory_space<smem>>
    %173 = vector.broadcast %172 : f32 to vector<1x128xf32>
    %174 = arith.mulf %95, %173 : vector<1x128xf32>
    %175 = arith.addf %171, %174 : vector<1x128xf32>
    %176 = math.tanh %175 : vector<1x128xf32>
    %c27 = arith.constant 27 : index
    %177 = memref.load %arg1[%c27] : memref<139xf32, #tpu.memory_space<smem>>
    %178 = vector.broadcast %177 : f32 to vector<1x128xf32>
    %179 = arith.mulf %20, %178 : vector<1x128xf32>
    %c63 = arith.constant 63 : index
    %180 = memref.load %arg1[%c63] : memref<139xf32, #tpu.memory_space<smem>>
    %181 = vector.broadcast %180 : f32 to vector<1x128xf32>
    %182 = arith.addf %179, %181 : vector<1x128xf32>
    %c33 = arith.constant 33 : index
    %183 = memref.load %arg1[%c33] : memref<139xf32, #tpu.memory_space<smem>>
    %184 = vector.broadcast %183 : f32 to vector<1x128xf32>
    %185 = arith.mulf %35, %184 : vector<1x128xf32>
    %186 = arith.addf %182, %185 : vector<1x128xf32>
    %c39 = arith.constant 39 : index
    %187 = memref.load %arg1[%c39] : memref<139xf32, #tpu.memory_space<smem>>
    %188 = vector.broadcast %187 : f32 to vector<1x128xf32>
    %189 = arith.mulf %50, %188 : vector<1x128xf32>
    %190 = arith.addf %186, %189 : vector<1x128xf32>
    %c45 = arith.constant 45 : index
    %191 = memref.load %arg1[%c45] : memref<139xf32, #tpu.memory_space<smem>>
    %192 = vector.broadcast %191 : f32 to vector<1x128xf32>
    %193 = arith.mulf %65, %192 : vector<1x128xf32>
    %194 = arith.addf %190, %193 : vector<1x128xf32>
    %c51 = arith.constant 51 : index
    %195 = memref.load %arg1[%c51] : memref<139xf32, #tpu.memory_space<smem>>
    %196 = vector.broadcast %195 : f32 to vector<1x128xf32>
    %197 = arith.mulf %80, %196 : vector<1x128xf32>
    %198 = arith.addf %194, %197 : vector<1x128xf32>
    %c57 = arith.constant 57 : index
    %199 = memref.load %arg1[%c57] : memref<139xf32, #tpu.memory_space<smem>>
    %200 = vector.broadcast %199 : f32 to vector<1x128xf32>
    %201 = arith.mulf %95, %200 : vector<1x128xf32>
    %202 = arith.addf %198, %201 : vector<1x128xf32>
    %203 = math.tanh %202 : vector<1x128xf32>
    %c28 = arith.constant 28 : index
    %204 = memref.load %arg1[%c28] : memref<139xf32, #tpu.memory_space<smem>>
    %205 = vector.broadcast %204 : f32 to vector<1x128xf32>
    %206 = arith.mulf %20, %205 : vector<1x128xf32>
    %c64 = arith.constant 64 : index
    %207 = memref.load %arg1[%c64] : memref<139xf32, #tpu.memory_space<smem>>
    %208 = vector.broadcast %207 : f32 to vector<1x128xf32>
    %209 = arith.addf %206, %208 : vector<1x128xf32>
    %c34 = arith.constant 34 : index
    %210 = memref.load %arg1[%c34] : memref<139xf32, #tpu.memory_space<smem>>
    %211 = vector.broadcast %210 : f32 to vector<1x128xf32>
    %212 = arith.mulf %35, %211 : vector<1x128xf32>
    %213 = arith.addf %209, %212 : vector<1x128xf32>
    %c40 = arith.constant 40 : index
    %214 = memref.load %arg1[%c40] : memref<139xf32, #tpu.memory_space<smem>>
    %215 = vector.broadcast %214 : f32 to vector<1x128xf32>
    %216 = arith.mulf %50, %215 : vector<1x128xf32>
    %217 = arith.addf %213, %216 : vector<1x128xf32>
    %c46 = arith.constant 46 : index
    %218 = memref.load %arg1[%c46] : memref<139xf32, #tpu.memory_space<smem>>
    %219 = vector.broadcast %218 : f32 to vector<1x128xf32>
    %220 = arith.mulf %65, %219 : vector<1x128xf32>
    %221 = arith.addf %217, %220 : vector<1x128xf32>
    %c52 = arith.constant 52 : index
    %222 = memref.load %arg1[%c52] : memref<139xf32, #tpu.memory_space<smem>>
    %223 = vector.broadcast %222 : f32 to vector<1x128xf32>
    %224 = arith.mulf %80, %223 : vector<1x128xf32>
    %225 = arith.addf %221, %224 : vector<1x128xf32>
    %c58 = arith.constant 58 : index
    %226 = memref.load %arg1[%c58] : memref<139xf32, #tpu.memory_space<smem>>
    %227 = vector.broadcast %226 : f32 to vector<1x128xf32>
    %228 = arith.mulf %95, %227 : vector<1x128xf32>
    %229 = arith.addf %225, %228 : vector<1x128xf32>
    %230 = math.tanh %229 : vector<1x128xf32>
    %c29 = arith.constant 29 : index
    %231 = memref.load %arg1[%c29] : memref<139xf32, #tpu.memory_space<smem>>
    %232 = vector.broadcast %231 : f32 to vector<1x128xf32>
    %233 = arith.mulf %20, %232 : vector<1x128xf32>
    %c65 = arith.constant 65 : index
    %234 = memref.load %arg1[%c65] : memref<139xf32, #tpu.memory_space<smem>>
    %235 = vector.broadcast %234 : f32 to vector<1x128xf32>
    %236 = arith.addf %233, %235 : vector<1x128xf32>
    %c35 = arith.constant 35 : index
    %237 = memref.load %arg1[%c35] : memref<139xf32, #tpu.memory_space<smem>>
    %238 = vector.broadcast %237 : f32 to vector<1x128xf32>
    %239 = arith.mulf %35, %238 : vector<1x128xf32>
    %240 = arith.addf %236, %239 : vector<1x128xf32>
    %c41 = arith.constant 41 : index
    %241 = memref.load %arg1[%c41] : memref<139xf32, #tpu.memory_space<smem>>
    %242 = vector.broadcast %241 : f32 to vector<1x128xf32>
    %243 = arith.mulf %50, %242 : vector<1x128xf32>
    %244 = arith.addf %240, %243 : vector<1x128xf32>
    %c47 = arith.constant 47 : index
    %245 = memref.load %arg1[%c47] : memref<139xf32, #tpu.memory_space<smem>>
    %246 = vector.broadcast %245 : f32 to vector<1x128xf32>
    %247 = arith.mulf %65, %246 : vector<1x128xf32>
    %248 = arith.addf %244, %247 : vector<1x128xf32>
    %c53 = arith.constant 53 : index
    %249 = memref.load %arg1[%c53] : memref<139xf32, #tpu.memory_space<smem>>
    %250 = vector.broadcast %249 : f32 to vector<1x128xf32>
    %251 = arith.mulf %80, %250 : vector<1x128xf32>
    %252 = arith.addf %248, %251 : vector<1x128xf32>
    %c59 = arith.constant 59 : index
    %253 = memref.load %arg1[%c59] : memref<139xf32, #tpu.memory_space<smem>>
    %254 = vector.broadcast %253 : f32 to vector<1x128xf32>
    %255 = arith.mulf %95, %254 : vector<1x128xf32>
    %256 = arith.addf %252, %255 : vector<1x128xf32>
    %257 = math.tanh %256 : vector<1x128xf32>
    %c66 = arith.constant 66 : index
    %258 = memref.load %arg1[%c66] : memref<139xf32, #tpu.memory_space<smem>>
    %259 = vector.broadcast %258 : f32 to vector<1x128xf32>
    %260 = arith.mulf %122, %259 : vector<1x128xf32>
    %c102 = arith.constant 102 : index
    %261 = memref.load %arg1[%c102] : memref<139xf32, #tpu.memory_space<smem>>
    %262 = vector.broadcast %261 : f32 to vector<1x128xf32>
    %263 = arith.addf %260, %262 : vector<1x128xf32>
    %c72 = arith.constant 72 : index
    %264 = memref.load %arg1[%c72] : memref<139xf32, #tpu.memory_space<smem>>
    %265 = vector.broadcast %264 : f32 to vector<1x128xf32>
    %266 = arith.mulf %149, %265 : vector<1x128xf32>
    %267 = arith.addf %263, %266 : vector<1x128xf32>
    %c78 = arith.constant 78 : index
    %268 = memref.load %arg1[%c78] : memref<139xf32, #tpu.memory_space<smem>>
    %269 = vector.broadcast %268 : f32 to vector<1x128xf32>
    %270 = arith.mulf %176, %269 : vector<1x128xf32>
    %271 = arith.addf %267, %270 : vector<1x128xf32>
    %c84 = arith.constant 84 : index
    %272 = memref.load %arg1[%c84] : memref<139xf32, #tpu.memory_space<smem>>
    %273 = vector.broadcast %272 : f32 to vector<1x128xf32>
    %274 = arith.mulf %203, %273 : vector<1x128xf32>
    %275 = arith.addf %271, %274 : vector<1x128xf32>
    %c90 = arith.constant 90 : index
    %276 = memref.load %arg1[%c90] : memref<139xf32, #tpu.memory_space<smem>>
    %277 = vector.broadcast %276 : f32 to vector<1x128xf32>
    %278 = arith.mulf %230, %277 : vector<1x128xf32>
    %279 = arith.addf %275, %278 : vector<1x128xf32>
    %c96 = arith.constant 96 : index
    %280 = memref.load %arg1[%c96] : memref<139xf32, #tpu.memory_space<smem>>
    %281 = vector.broadcast %280 : f32 to vector<1x128xf32>
    %282 = arith.mulf %257, %281 : vector<1x128xf32>
    %283 = arith.addf %279, %282 : vector<1x128xf32>
    %284 = math.tanh %283 : vector<1x128xf32>
    %c67 = arith.constant 67 : index
    %285 = memref.load %arg1[%c67] : memref<139xf32, #tpu.memory_space<smem>>
    %286 = vector.broadcast %285 : f32 to vector<1x128xf32>
    %287 = arith.mulf %122, %286 : vector<1x128xf32>
    %c103 = arith.constant 103 : index
    %288 = memref.load %arg1[%c103] : memref<139xf32, #tpu.memory_space<smem>>
    %289 = vector.broadcast %288 : f32 to vector<1x128xf32>
    %290 = arith.addf %287, %289 : vector<1x128xf32>
    %c73 = arith.constant 73 : index
    %291 = memref.load %arg1[%c73] : memref<139xf32, #tpu.memory_space<smem>>
    %292 = vector.broadcast %291 : f32 to vector<1x128xf32>
    %293 = arith.mulf %149, %292 : vector<1x128xf32>
    %294 = arith.addf %290, %293 : vector<1x128xf32>
    %c79 = arith.constant 79 : index
    %295 = memref.load %arg1[%c79] : memref<139xf32, #tpu.memory_space<smem>>
    %296 = vector.broadcast %295 : f32 to vector<1x128xf32>
    %297 = arith.mulf %176, %296 : vector<1x128xf32>
    %298 = arith.addf %294, %297 : vector<1x128xf32>
    %c85 = arith.constant 85 : index
    %299 = memref.load %arg1[%c85] : memref<139xf32, #tpu.memory_space<smem>>
    %300 = vector.broadcast %299 : f32 to vector<1x128xf32>
    %301 = arith.mulf %203, %300 : vector<1x128xf32>
    %302 = arith.addf %298, %301 : vector<1x128xf32>
    %c91 = arith.constant 91 : index
    %303 = memref.load %arg1[%c91] : memref<139xf32, #tpu.memory_space<smem>>
    %304 = vector.broadcast %303 : f32 to vector<1x128xf32>
    %305 = arith.mulf %230, %304 : vector<1x128xf32>
    %306 = arith.addf %302, %305 : vector<1x128xf32>
    %c97 = arith.constant 97 : index
    %307 = memref.load %arg1[%c97] : memref<139xf32, #tpu.memory_space<smem>>
    %308 = vector.broadcast %307 : f32 to vector<1x128xf32>
    %309 = arith.mulf %257, %308 : vector<1x128xf32>
    %310 = arith.addf %306, %309 : vector<1x128xf32>
    %311 = math.tanh %310 : vector<1x128xf32>
    %c68 = arith.constant 68 : index
    %312 = memref.load %arg1[%c68] : memref<139xf32, #tpu.memory_space<smem>>
    %313 = vector.broadcast %312 : f32 to vector<1x128xf32>
    %314 = arith.mulf %122, %313 : vector<1x128xf32>
    %c104 = arith.constant 104 : index
    %315 = memref.load %arg1[%c104] : memref<139xf32, #tpu.memory_space<smem>>
    %316 = vector.broadcast %315 : f32 to vector<1x128xf32>
    %317 = arith.addf %314, %316 : vector<1x128xf32>
    %c74 = arith.constant 74 : index
    %318 = memref.load %arg1[%c74] : memref<139xf32, #tpu.memory_space<smem>>
    %319 = vector.broadcast %318 : f32 to vector<1x128xf32>
    %320 = arith.mulf %149, %319 : vector<1x128xf32>
    %321 = arith.addf %317, %320 : vector<1x128xf32>
    %c80 = arith.constant 80 : index
    %322 = memref.load %arg1[%c80] : memref<139xf32, #tpu.memory_space<smem>>
    %323 = vector.broadcast %322 : f32 to vector<1x128xf32>
    %324 = arith.mulf %176, %323 : vector<1x128xf32>
    %325 = arith.addf %321, %324 : vector<1x128xf32>
    %c86 = arith.constant 86 : index
    %326 = memref.load %arg1[%c86] : memref<139xf32, #tpu.memory_space<smem>>
    %327 = vector.broadcast %326 : f32 to vector<1x128xf32>
    %328 = arith.mulf %203, %327 : vector<1x128xf32>
    %329 = arith.addf %325, %328 : vector<1x128xf32>
    %c92 = arith.constant 92 : index
    %330 = memref.load %arg1[%c92] : memref<139xf32, #tpu.memory_space<smem>>
    %331 = vector.broadcast %330 : f32 to vector<1x128xf32>
    %332 = arith.mulf %230, %331 : vector<1x128xf32>
    %333 = arith.addf %329, %332 : vector<1x128xf32>
    %c98 = arith.constant 98 : index
    %334 = memref.load %arg1[%c98] : memref<139xf32, #tpu.memory_space<smem>>
    %335 = vector.broadcast %334 : f32 to vector<1x128xf32>
    %336 = arith.mulf %257, %335 : vector<1x128xf32>
    %337 = arith.addf %333, %336 : vector<1x128xf32>
    %338 = math.tanh %337 : vector<1x128xf32>
    %c69 = arith.constant 69 : index
    %339 = memref.load %arg1[%c69] : memref<139xf32, #tpu.memory_space<smem>>
    %340 = vector.broadcast %339 : f32 to vector<1x128xf32>
    %341 = arith.mulf %122, %340 : vector<1x128xf32>
    %c105 = arith.constant 105 : index
    %342 = memref.load %arg1[%c105] : memref<139xf32, #tpu.memory_space<smem>>
    %343 = vector.broadcast %342 : f32 to vector<1x128xf32>
    %344 = arith.addf %341, %343 : vector<1x128xf32>
    %c75 = arith.constant 75 : index
    %345 = memref.load %arg1[%c75] : memref<139xf32, #tpu.memory_space<smem>>
    %346 = vector.broadcast %345 : f32 to vector<1x128xf32>
    %347 = arith.mulf %149, %346 : vector<1x128xf32>
    %348 = arith.addf %344, %347 : vector<1x128xf32>
    %c81 = arith.constant 81 : index
    %349 = memref.load %arg1[%c81] : memref<139xf32, #tpu.memory_space<smem>>
    %350 = vector.broadcast %349 : f32 to vector<1x128xf32>
    %351 = arith.mulf %176, %350 : vector<1x128xf32>
    %352 = arith.addf %348, %351 : vector<1x128xf32>
    %c87 = arith.constant 87 : index
    %353 = memref.load %arg1[%c87] : memref<139xf32, #tpu.memory_space<smem>>
    %354 = vector.broadcast %353 : f32 to vector<1x128xf32>
    %355 = arith.mulf %203, %354 : vector<1x128xf32>
    %356 = arith.addf %352, %355 : vector<1x128xf32>
    %c93 = arith.constant 93 : index
    %357 = memref.load %arg1[%c93] : memref<139xf32, #tpu.memory_space<smem>>
    %358 = vector.broadcast %357 : f32 to vector<1x128xf32>
    %359 = arith.mulf %230, %358 : vector<1x128xf32>
    %360 = arith.addf %356, %359 : vector<1x128xf32>
    %c99 = arith.constant 99 : index
    %361 = memref.load %arg1[%c99] : memref<139xf32, #tpu.memory_space<smem>>
    %362 = vector.broadcast %361 : f32 to vector<1x128xf32>
    %363 = arith.mulf %257, %362 : vector<1x128xf32>
    %364 = arith.addf %360, %363 : vector<1x128xf32>
    %365 = math.tanh %364 : vector<1x128xf32>
    %c70 = arith.constant 70 : index
    %366 = memref.load %arg1[%c70] : memref<139xf32, #tpu.memory_space<smem>>
    %367 = vector.broadcast %366 : f32 to vector<1x128xf32>
    %368 = arith.mulf %122, %367 : vector<1x128xf32>
    %c106 = arith.constant 106 : index
    %369 = memref.load %arg1[%c106] : memref<139xf32, #tpu.memory_space<smem>>
    %370 = vector.broadcast %369 : f32 to vector<1x128xf32>
    %371 = arith.addf %368, %370 : vector<1x128xf32>
    %c76 = arith.constant 76 : index
    %372 = memref.load %arg1[%c76] : memref<139xf32, #tpu.memory_space<smem>>
    %373 = vector.broadcast %372 : f32 to vector<1x128xf32>
    %374 = arith.mulf %149, %373 : vector<1x128xf32>
    %375 = arith.addf %371, %374 : vector<1x128xf32>
    %c82 = arith.constant 82 : index
    %376 = memref.load %arg1[%c82] : memref<139xf32, #tpu.memory_space<smem>>
    %377 = vector.broadcast %376 : f32 to vector<1x128xf32>
    %378 = arith.mulf %176, %377 : vector<1x128xf32>
    %379 = arith.addf %375, %378 : vector<1x128xf32>
    %c88 = arith.constant 88 : index
    %380 = memref.load %arg1[%c88] : memref<139xf32, #tpu.memory_space<smem>>
    %381 = vector.broadcast %380 : f32 to vector<1x128xf32>
    %382 = arith.mulf %203, %381 : vector<1x128xf32>
    %383 = arith.addf %379, %382 : vector<1x128xf32>
    %c94 = arith.constant 94 : index
    %384 = memref.load %arg1[%c94] : memref<139xf32, #tpu.memory_space<smem>>
    %385 = vector.broadcast %384 : f32 to vector<1x128xf32>
    %386 = arith.mulf %230, %385 : vector<1x128xf32>
    %387 = arith.addf %383, %386 : vector<1x128xf32>
    %c100 = arith.constant 100 : index
    %388 = memref.load %arg1[%c100] : memref<139xf32, #tpu.memory_space<smem>>
    %389 = vector.broadcast %388 : f32 to vector<1x128xf32>
    %390 = arith.mulf %257, %389 : vector<1x128xf32>
    %391 = arith.addf %387, %390 : vector<1x128xf32>
    %392 = math.tanh %391 : vector<1x128xf32>
    %c71 = arith.constant 71 : index
    %393 = memref.load %arg1[%c71] : memref<139xf32, #tpu.memory_space<smem>>
    %394 = vector.broadcast %393 : f32 to vector<1x128xf32>
    %395 = arith.mulf %122, %394 : vector<1x128xf32>
    %c107 = arith.constant 107 : index
    %396 = memref.load %arg1[%c107] : memref<139xf32, #tpu.memory_space<smem>>
    %397 = vector.broadcast %396 : f32 to vector<1x128xf32>
    %398 = arith.addf %395, %397 : vector<1x128xf32>
    %c77 = arith.constant 77 : index
    %399 = memref.load %arg1[%c77] : memref<139xf32, #tpu.memory_space<smem>>
    %400 = vector.broadcast %399 : f32 to vector<1x128xf32>
    %401 = arith.mulf %149, %400 : vector<1x128xf32>
    %402 = arith.addf %398, %401 : vector<1x128xf32>
    %c83 = arith.constant 83 : index
    %403 = memref.load %arg1[%c83] : memref<139xf32, #tpu.memory_space<smem>>
    %404 = vector.broadcast %403 : f32 to vector<1x128xf32>
    %405 = arith.mulf %176, %404 : vector<1x128xf32>
    %406 = arith.addf %402, %405 : vector<1x128xf32>
    %c89 = arith.constant 89 : index
    %407 = memref.load %arg1[%c89] : memref<139xf32, #tpu.memory_space<smem>>
    %408 = vector.broadcast %407 : f32 to vector<1x128xf32>
    %409 = arith.mulf %203, %408 : vector<1x128xf32>
    %410 = arith.addf %406, %409 : vector<1x128xf32>
    %c95 = arith.constant 95 : index
    %411 = memref.load %arg1[%c95] : memref<139xf32, #tpu.memory_space<smem>>
    %412 = vector.broadcast %411 : f32 to vector<1x128xf32>
    %413 = arith.mulf %230, %412 : vector<1x128xf32>
    %414 = arith.addf %410, %413 : vector<1x128xf32>
    %c101 = arith.constant 101 : index
    %415 = memref.load %arg1[%c101] : memref<139xf32, #tpu.memory_space<smem>>
    %416 = vector.broadcast %415 : f32 to vector<1x128xf32>
    %417 = arith.mulf %257, %416 : vector<1x128xf32>
    %418 = arith.addf %414, %417 : vector<1x128xf32>
    %419 = math.tanh %418 : vector<1x128xf32>
    %c108 = arith.constant 108 : index
    %420 = memref.load %arg1[%c108] : memref<139xf32, #tpu.memory_space<smem>>
    %421 = vector.broadcast %420 : f32 to vector<1x128xf32>
    %422 = arith.mulf %284, %421 : vector<1x128xf32>
    %c126 = arith.constant 126 : index
    %423 = memref.load %arg1[%c126] : memref<139xf32, #tpu.memory_space<smem>>
    %424 = vector.broadcast %423 : f32 to vector<1x128xf32>
    %425 = arith.addf %422, %424 : vector<1x128xf32>
    %c111 = arith.constant 111 : index
    %426 = memref.load %arg1[%c111] : memref<139xf32, #tpu.memory_space<smem>>
    %427 = vector.broadcast %426 : f32 to vector<1x128xf32>
    %428 = arith.mulf %311, %427 : vector<1x128xf32>
    %429 = arith.addf %425, %428 : vector<1x128xf32>
    %c114 = arith.constant 114 : index
    %430 = memref.load %arg1[%c114] : memref<139xf32, #tpu.memory_space<smem>>
    %431 = vector.broadcast %430 : f32 to vector<1x128xf32>
    %432 = arith.mulf %338, %431 : vector<1x128xf32>
    %433 = arith.addf %429, %432 : vector<1x128xf32>
    %c117 = arith.constant 117 : index
    %434 = memref.load %arg1[%c117] : memref<139xf32, #tpu.memory_space<smem>>
    %435 = vector.broadcast %434 : f32 to vector<1x128xf32>
    %436 = arith.mulf %365, %435 : vector<1x128xf32>
    %437 = arith.addf %433, %436 : vector<1x128xf32>
    %c120 = arith.constant 120 : index
    %438 = memref.load %arg1[%c120] : memref<139xf32, #tpu.memory_space<smem>>
    %439 = vector.broadcast %438 : f32 to vector<1x128xf32>
    %440 = arith.mulf %392, %439 : vector<1x128xf32>
    %441 = arith.addf %437, %440 : vector<1x128xf32>
    %c123 = arith.constant 123 : index
    %442 = memref.load %arg1[%c123] : memref<139xf32, #tpu.memory_space<smem>>
    %443 = vector.broadcast %442 : f32 to vector<1x128xf32>
    %444 = arith.mulf %419, %443 : vector<1x128xf32>
    %445 = arith.addf %441, %444 : vector<1x128xf32>
    %446 = math.tanh %445 : vector<1x128xf32>
    %c109 = arith.constant 109 : index
    %447 = memref.load %arg1[%c109] : memref<139xf32, #tpu.memory_space<smem>>
    %448 = vector.broadcast %447 : f32 to vector<1x128xf32>
    %449 = arith.mulf %284, %448 : vector<1x128xf32>
    %c127 = arith.constant 127 : index
    %450 = memref.load %arg1[%c127] : memref<139xf32, #tpu.memory_space<smem>>
    %451 = vector.broadcast %450 : f32 to vector<1x128xf32>
    %452 = arith.addf %449, %451 : vector<1x128xf32>
    %c112 = arith.constant 112 : index
    %453 = memref.load %arg1[%c112] : memref<139xf32, #tpu.memory_space<smem>>
    %454 = vector.broadcast %453 : f32 to vector<1x128xf32>
    %455 = arith.mulf %311, %454 : vector<1x128xf32>
    %456 = arith.addf %452, %455 : vector<1x128xf32>
    %c115 = arith.constant 115 : index
    %457 = memref.load %arg1[%c115] : memref<139xf32, #tpu.memory_space<smem>>
    %458 = vector.broadcast %457 : f32 to vector<1x128xf32>
    %459 = arith.mulf %338, %458 : vector<1x128xf32>
    %460 = arith.addf %456, %459 : vector<1x128xf32>
    %c118 = arith.constant 118 : index
    %461 = memref.load %arg1[%c118] : memref<139xf32, #tpu.memory_space<smem>>
    %462 = vector.broadcast %461 : f32 to vector<1x128xf32>
    %463 = arith.mulf %365, %462 : vector<1x128xf32>
    %464 = arith.addf %460, %463 : vector<1x128xf32>
    %c121 = arith.constant 121 : index
    %465 = memref.load %arg1[%c121] : memref<139xf32, #tpu.memory_space<smem>>
    %466 = vector.broadcast %465 : f32 to vector<1x128xf32>
    %467 = arith.mulf %392, %466 : vector<1x128xf32>
    %468 = arith.addf %464, %467 : vector<1x128xf32>
    %c124 = arith.constant 124 : index
    %469 = memref.load %arg1[%c124] : memref<139xf32, #tpu.memory_space<smem>>
    %470 = vector.broadcast %469 : f32 to vector<1x128xf32>
    %471 = arith.mulf %419, %470 : vector<1x128xf32>
    %472 = arith.addf %468, %471 : vector<1x128xf32>
    %473 = math.tanh %472 : vector<1x128xf32>
    %c110 = arith.constant 110 : index
    %474 = memref.load %arg1[%c110] : memref<139xf32, #tpu.memory_space<smem>>
    %475 = vector.broadcast %474 : f32 to vector<1x128xf32>
    %476 = arith.mulf %284, %475 : vector<1x128xf32>
    %c128 = arith.constant 128 : index
    %477 = memref.load %arg1[%c128] : memref<139xf32, #tpu.memory_space<smem>>
    %478 = vector.broadcast %477 : f32 to vector<1x128xf32>
    %479 = arith.addf %476, %478 : vector<1x128xf32>
    %c113 = arith.constant 113 : index
    %480 = memref.load %arg1[%c113] : memref<139xf32, #tpu.memory_space<smem>>
    %481 = vector.broadcast %480 : f32 to vector<1x128xf32>
    %482 = arith.mulf %311, %481 : vector<1x128xf32>
    %483 = arith.addf %479, %482 : vector<1x128xf32>
    %c116 = arith.constant 116 : index
    %484 = memref.load %arg1[%c116] : memref<139xf32, #tpu.memory_space<smem>>
    %485 = vector.broadcast %484 : f32 to vector<1x128xf32>
    %486 = arith.mulf %338, %485 : vector<1x128xf32>
    %487 = arith.addf %483, %486 : vector<1x128xf32>
    %c119 = arith.constant 119 : index
    %488 = memref.load %arg1[%c119] : memref<139xf32, #tpu.memory_space<smem>>
    %489 = vector.broadcast %488 : f32 to vector<1x128xf32>
    %490 = arith.mulf %365, %489 : vector<1x128xf32>
    %491 = arith.addf %487, %490 : vector<1x128xf32>
    %c122 = arith.constant 122 : index
    %492 = memref.load %arg1[%c122] : memref<139xf32, #tpu.memory_space<smem>>
    %493 = vector.broadcast %492 : f32 to vector<1x128xf32>
    %494 = arith.mulf %392, %493 : vector<1x128xf32>
    %495 = arith.addf %491, %494 : vector<1x128xf32>
    %c125 = arith.constant 125 : index
    %496 = memref.load %arg1[%c125] : memref<139xf32, #tpu.memory_space<smem>>
    %497 = vector.broadcast %496 : f32 to vector<1x128xf32>
    %498 = arith.mulf %419, %497 : vector<1x128xf32>
    %499 = arith.addf %495, %498 : vector<1x128xf32>
    %500 = math.tanh %499 : vector<1x128xf32>
    %501 = arith.addf %446, %473 : vector<1x128xf32>
    %502 = arith.addf %501, %500 : vector<1x128xf32>
    %cst = arith.constant 0.333333343 : f32
    %503 = vector.broadcast %cst : f32 to vector<1x128xf32>
    %504 = arith.mulf %502, %503 : vector<1x128xf32>
    %505 = arith.subf %446, %504 : vector<1x128xf32>
    %506 = arith.subf %473, %504 : vector<1x128xf32>
    %507 = arith.subf %500, %504 : vector<1x128xf32>
    %508 = arith.mulf %505, %505 : vector<1x128xf32>
    %509 = arith.mulf %506, %506 : vector<1x128xf32>
    %510 = arith.addf %508, %509 : vector<1x128xf32>
    %511 = arith.mulf %507, %507 : vector<1x128xf32>
    %512 = arith.addf %510, %511 : vector<1x128xf32>
    %cst_9 = arith.constant 0.333333343 : f32
    %513 = vector.broadcast %cst_9 : f32 to vector<1x128xf32>
    %514 = arith.mulf %512, %513 : vector<1x128xf32>
    %cst_10 = arith.constant 9.99999974E-6 : f32
    %515 = vector.broadcast %cst_10 : f32 to vector<1x128xf32>
    %516 = arith.addf %514, %515 : vector<1x128xf32>
    %517 = math.rsqrt %516 : vector<1x128xf32>
    %518 = arith.mulf %505, %517 : vector<1x128xf32>
    %c129 = arith.constant 129 : index
    %519 = memref.load %arg1[%c129] : memref<139xf32, #tpu.memory_space<smem>>
    %520 = vector.broadcast %519 : f32 to vector<1x128xf32>
    %521 = arith.mulf %518, %520 : vector<1x128xf32>
    %c132 = arith.constant 132 : index
    %522 = memref.load %arg1[%c132] : memref<139xf32, #tpu.memory_space<smem>>
    %523 = vector.broadcast %522 : f32 to vector<1x128xf32>
    %524 = arith.addf %521, %523 : vector<1x128xf32>
    %525 = arith.mulf %506, %517 : vector<1x128xf32>
    %c130 = arith.constant 130 : index
    %526 = memref.load %arg1[%c130] : memref<139xf32, #tpu.memory_space<smem>>
    %527 = vector.broadcast %526 : f32 to vector<1x128xf32>
    %528 = arith.mulf %525, %527 : vector<1x128xf32>
    %c133 = arith.constant 133 : index
    %529 = memref.load %arg1[%c133] : memref<139xf32, #tpu.memory_space<smem>>
    %530 = vector.broadcast %529 : f32 to vector<1x128xf32>
    %531 = arith.addf %528, %530 : vector<1x128xf32>
    %532 = arith.mulf %507, %517 : vector<1x128xf32>
    %c131 = arith.constant 131 : index
    %533 = memref.load %arg1[%c131] : memref<139xf32, #tpu.memory_space<smem>>
    %534 = vector.broadcast %533 : f32 to vector<1x128xf32>
    %535 = arith.mulf %532, %534 : vector<1x128xf32>
    %c134 = arith.constant 134 : index
    %536 = memref.load %arg1[%c134] : memref<139xf32, #tpu.memory_space<smem>>
    %537 = vector.broadcast %536 : f32 to vector<1x128xf32>
    %538 = arith.addf %535, %537 : vector<1x128xf32>
    %c135 = arith.constant 135 : index
    %539 = memref.load %arg1[%c135] : memref<139xf32, #tpu.memory_space<smem>>
    %540 = vector.broadcast %539 : f32 to vector<1x128xf32>
    %541 = arith.mulf %524, %540 : vector<1x128xf32>
    %c136 = arith.constant 136 : index
    %542 = memref.load %arg1[%c136] : memref<139xf32, #tpu.memory_space<smem>>
    %543 = vector.broadcast %542 : f32 to vector<1x128xf32>
    %544 = arith.mulf %531, %543 : vector<1x128xf32>
    %545 = arith.addf %541, %544 : vector<1x128xf32>
    %c137 = arith.constant 137 : index
    %546 = memref.load %arg1[%c137] : memref<139xf32, #tpu.memory_space<smem>>
    %547 = vector.broadcast %546 : f32 to vector<1x128xf32>
    %548 = arith.mulf %538, %547 : vector<1x128xf32>
    %549 = arith.addf %545, %548 : vector<1x128xf32>
    %c138 = arith.constant 138 : index
    %550 = memref.load %arg1[%c138] : memref<139xf32, #tpu.memory_space<smem>>
    %551 = vector.broadcast %550 : f32 to vector<1x128xf32>
    %552 = arith.addf %549, %551 : vector<1x128xf32>
    %c0_11 = arith.constant 0 : index
    %c0_12 = arith.constant 0 : index
    %553 = vector.load %arg3[%c0_11, %c0_12] : memref<1x128xf32, #tpu.memory_space<vmem>>, vector<1x128xf32>
    tpu.vector_store %arg3[%c0_11, %c0_12], %552 {strides = array<i32>} : memref<1x128xf32, #tpu.memory_space<vmem>>, vector<1x128xf32>,
    return
  }
  func.func @transform_0(%arg0: i32) -> i32 {
    %c0_i32 = arith.constant 0 : i32
    %c0_i32_0 = arith.constant 0 : i32
    return %c0_i32 : i32
  }
  func.func @transform_1(%arg0: i32) -> (i32, i32, i32) {
    %c0_i32 = arith.constant 0 : i32
    %c0_i32_0 = arith.constant 0 : i32
    %c0_i32_1 = arith.constant 0 : i32
    return %c0_i32, %arg0, %c0_i32_0 : i32, i32, i32
  }
  func.func @transform_2(%arg0: i32) -> (i32, i32) {
    %c0_i32 = arith.constant 0 : i32
    %c0_i32_0 = arith.constant 0 : i32
    return %arg0, %c0_i32 : i32, i32
  }
}

</mosaic_0001>

<bundles_post_ra>
// kernel: tpu_custom_call.1
= control target key start
LH: loop header
LB: loop body
LE: loop exit
PB: predicated region body
PF: predicated region fallthrough
CT: control target
= control target key end

     0   :  { %7 = vsyncpa [#allocation5], 0  ;;  %s1127_s0 = inlined_call_operand.hbm [shape: f32[139], index: 0, kind: input, shape index: {}]   ;;  %s1128_s1 = inlined_call_operand.hbm [shape: f32[3,1,128], index: 1, kind: input, shape index: {}]   ;;  %s1129_s2 = inlined_call_operand.hbm [shape: f32[1,128], index: 2, kind: output, shape index: {}]  }
   0x1   :  { %8 = vsyncpa [#allocation3], 0 }
   0x2   :  { %9 = vsyncpa [#allocation4], 0  ;;  %s844_s9 = smov [#allocation2]   ;;  %s845_s12 = smov [#allocation6]  }
   0x3   :  { %17 = dma.hbm_to_smem %s1127_s0, 32, %s844_s9, [#allocation5]  }
   0x4   :  { %s23_s13 = sshll.u32 %s845_s12, 4  ;;  %s24_s13 = int_to_ptr.vmem [resolvable:$true] %s23_s13 }
   0x5   :  { %s806_s14 = scalar_lea.vmem %s24_s13, 48  ;;  %s810_s15 = scalar_lea.vmem %s24_s13, 64 }
   0x6   :  { %p807_p0 = scmp.ne.s32.totalorder %s24_s13, %s806_s14  ;;  %p811_p1 = scmp.lt.s32.totalorder %s24_s13, %s24_s13 }
   0x7   :  { %p812_p2 = scmp.lt.s32.totalorder %s810_s15, %s806_s14 }
   0x9   :  { %p813_p3 = por %p812_p2, %p811_p1 }
   0xb   :  { %p814_p4 = pnand %p813_p3, %p807_p0 }
   0xd   :  { %817 = shalt.err (!%p814_p4)
}
   0xe   :  { %s846_s16 = smov 16   ;;  %s847_s17 = smov 1  }
   0xf   :  { %29 = dma.hbm_to_vmem [thread:$0]  %s1128_s1, 48, %s24_s13, [#allocation3], %s846_s16, %s846_s16, %s847_s17  }
  0x10   :  { %838 = dma.done.wait [#allocation5], 32  }
  0x11   :  { %839 = vsyncadd [#allocation5], 4294967264 }
  0x12   :  { %840 = dma.done.wait [#allocation3], 48  }
  0x13   :  { %841 = vsyncadd [#allocation3], 4294967248 }
  0x14   :  { %36 = sfence }
  0x15   :  { %s42_s0 = sld [smem:[#allocation2]]  ;;  %v870_v0 = vld [vmem:[#allocation6] sm:$0x1]  ;;  %v872_v1 = vld [vmem:[#allocation6 + $0x1] sm:$0x1] }
  0x16   :  { %s603_s20 = sld [smem:[#allocation2 + $0x12]]  ;;  %v874_v3 = vld [vmem:[#allocation6 + $0x2] sm:$0x1] }
  0x17   :  { %s604_s21 = sld [smem:[#allocation2 + $0x6]] }
  0x18   :  { %s605_s22 = sld [smem:[#allocation2 + $0xc]] }
  0x19   :  { %s606_s23 = sld [smem:[#allocation2 + $0x1]] }
  0x1a   :  { %s607_s24 = sld [smem:[#allocation2 + $0x13]] }
  0x1b   :  { %v43_v2 = vstv %s42_s0  ;;  %s608_s25 = sld [smem:[#allocation2 + $0x7]] }
  0x1c   :  { %v44_v4 = vmul.f32 %v43_v2, %v870_v0  ;;  %v46_v5 = vstv %s603_s20  ;;  %s609_s1 = sld [smem:[#allocation2 + $0xd]] }
  0x1d   :  { %v49_v6 = vstv %s604_s21  ;;  %s610_s26 = sld [smem:[#allocation2 + $0x2]] }
  0x1e   :  { %v47_v7 = vadd.f32 %v46_v5, %v44_v4  ;;  %v50_v8 = vmul.f32 %v49_v6, %v872_v1  ;;  %v53_v9 = vstv %s605_s22  ;;  %s611_s27 = sld [smem:[#allocation2 + $0x14]] }
  0x1f   :  { %v54_v10 = vmul.f32 %v53_v9, %v874_v3  ;;  %v58_v11 = vstv %s606_s23  ;;  %s612_s28 = sld [smem:[#allocation2 + $0x8]] }
  0x20   :  { %v51_v12 = vadd.f32 %v50_v8, %v47_v7  ;;  %v59_v13 = vmul.f32 %v58_v11, %v870_v0  ;;  %v61_v14 = vstv %s607_s24  ;;  %s613_s29 = sld [smem:[#allocation2 + $0xe]] }
  0x21   :  { %v64_v15 = vstv %s608_s25  ;;  %s614_s30 = sld [smem:[#allocation2 + $0x3]] }
  0x22   :  { %v55_v16 = vadd.f32 %v54_v10, %v51_v12  ;;  %v62_v17 = vadd.f32 %v61_v14, %v59_v13  ;;  %v65_v18 = vmul.f32 %v64_v15, %v872_v1  ;;  %v68_v19 = vstv %s609_s1  ;;  %s615_s3 = sld [smem:[#allocation2 + $0x15]] }
  0x23   :  { %v69_v20 = vmul.f32 %v68_v19, %v874_v3  ;;  %v73_v21 = vstv %s610_s26  ;;  %s616_s4 = sld [smem:[#allocation2 + $0x9]] }
  0x24   :  { %746 = vtanh.f32 %v55_v16  ;;  %v66_v22 = vadd.f32 %v65_v18, %v62_v17  ;;  %v74_v23 = vmul.f32 %v73_v21, %v870_v0  ;;  %v76_v24 = vstv %s611_s27  ;;  %s617_s5 = sld [smem:[#allocation2 + $0xf]] }
  0x25   :  { %v79_v25 = vstv %s612_s28  ;;  %s618_s6 = sld [smem:[#allocation2 + $0x4]] }
  0x26   :  { %v70_v26 = vadd.f32 %v69_v20, %v66_v22  ;;  %v77_v27 = vadd.f32 %v76_v24, %v74_v23  ;;  %v80_v28 = vmul.f32 %v79_v25, %v872_v1  ;;  %v83_v29 = vstv %s613_s29  ;;  %s619_s7 = sld [smem:[#allocation2 + $0x16]] }
  0x27   :  { %v84_v30 = vmul.f32 %v83_v29, %v874_v3  ;;  %v88_v31 = vstv %s614_s30  ;;  %s620_s8 = sld [smem:[#allocation2 + $0xa]] }
  0x28   :  { %748 = vtanh.f32 %v70_v26  ;;  %v81_v32 = vadd.f32 %v80_v28, %v77_v27  ;;  %v89_v33 = vmul.f32 %v88_v31, %v870_v0  ;;  %v91_v34 = vstv %s615_s3  ;;  %s621_s9 = sld [smem:[#allocation2 + $0x10]] }
  0x29   :  { %v94_v35 = vstv %s616_s4  ;;  %s622_s10 = sld [smem:[#allocation2 + $0x5]] }
  0x2a   :  { %v85_v36 = vadd.f32 %v84_v30, %v81_v32  ;;  %v92_v37 = vadd.f32 %v91_v34, %v89_v33  ;;  %v95_v38 = vmul.f32 %v94_v35, %v872_v1  ;;  %v98_v39 = vstv %s617_s5  ;;  %s623_s11 = sld [smem:[#allocation2 + $0x17]] }
  0x2b   :  { %v99_v40 = vmul.f32 %v98_v39, %v874_v3  ;;  %v103_v41 = vstv %s618_s6  ;;  %s624_s12 = sld [smem:[#allocation2 + $0xb]] }
  0x2c   :  { %750 = vtanh.f32 %v85_v36  ;;  %v96_v42 = vadd.f32 %v95_v38, %v92_v37  ;;  %v104_v43 = vmul.f32 %v103_v41, %v870_v0  ;;  %v106_v44 = vstv %s619_s7  ;;  %s625_s13 = sld [smem:[#allocation2 + $0x11]] }
  0x2d   :  { %v109_v45 = vstv %s620_s8  ;;  %s626_s14 = sld [smem:[#allocation2 + $0x18]] }
  0x2e   :  { %v100_v46 = vadd.f32 %v99_v40, %v96_v42  ;;  %v107_v47 = vadd.f32 %v106_v44, %v104_v43  ;;  %v110_v48 = vmul.f32 %v109_v45, %v872_v1  ;;  %v113_v49 = vstv %s621_s9  ;;  %s627_s15 = sld [smem:[#allocation2 + $0x3c]] }
  0x2f   :  { %v114_v50 = vmul.f32 %v113_v49, %v874_v3  ;;  %v118_v51 = vstv %s622_s10  ;;  %s628_s16 = sld [smem:[#allocation2 + $0x1e]] }
  0x30   :  { %752 = vtanh.f32 %v100_v46  ;;  %v111_v52 = vadd.f32 %v110_v48, %v107_v47  ;;  %v119_v53 = vmul.f32 %v118_v51, %v870_v0  ;;  %v121_v54 = vstv %s623_s11  ;;  %s892_s17 = sld [smem:[#allocation2 + $0x24]] }
  0x31   :  { %v894_v55 = vpop.eup %746  ;;  %v124_v56 = vstv %s624_s12  ;;  %s896_s18 = sld [smem:[#allocation2 + $0x2a]] }
  0x32   :  { %v115_v57 = vadd.f32 %v114_v50, %v111_v52  ;;  %v122_v58 = vadd.f32 %v121_v54, %v119_v53  ;;  %v125_v59 = vmul.f32 %v124_v56, %v872_v1  ;;  %v128_v60 = vstv %s625_s13  ;;  %s899_s19 = sld [smem:[#allocation2 + $0x30]] }
  0x33   :  { %v129_v61 = vmul.f32 %v128_v60, %v874_v3  ;;  %v133_v62 = vstv %s626_s14  ;;  %s902_s0 = sld [smem:[#allocation2 + $0x36]] }
  0x34   :  { %754 = vtanh.f32 %v115_v57  ;;  %v126_v63 = vadd.f32 %v125_v59, %v122_v58  ;;  %v134_v0 = vmul.f32 %v894_v55, %v133_v62  ;;  %v136_v2 = vstv %s627_s15  ;;  %s633_s20 = sld [smem:[#allocation2 + $0x19]] }
  0x35   :  { %v905_v4 = vpop.eup %748  ;;  %v139_v5 = vstv %s628_s16  ;;  %s634_s21 = sld [smem:[#allocation2 + $0x3d]] }
  0x36   :  { %v130_v1 = vadd.f32 %v129_v61, %v126_v63  ;;  %v137_v6 = vadd.f32 %v136_v2, %v134_v0  ;;  %v140_v7 = vmul.f32 %v905_v4, %v139_v5  ;;  %s635_s22 = sld [smem:[#allocation2 + $0x1f]]  ;;  %v143_v3 = vstv %s892_s17 }
  0x37   :  { %s636_s23 = sld [smem:[#allocation2 + $0x25]]  ;;  %v147_v12 = vstv %s896_s18 }
  0x38   :  { %756 = vtanh.f32 %v130_v1  ;;  %s637_s24 = sld [smem:[#allocation2 + $0x2b]]  ;;  %v141_v9 = vadd.f32 %v140_v7, %v137_v6  ;;  %v151_v24 = vstv %s899_s19 }
  0x39   :  { %v909_v8 = vpop.eup %750  ;;  %s911_s25 = sld [smem:[#allocation2 + $0x31]]  ;;  %v155_v35 = vstv %s902_s0 }
  0x3a   :  { %v144_v10 = vmul.f32 %v909_v8, %v143_v3  ;;  %v160_v11 = vstv %s633_s20  ;;  %s914_s1 = sld [smem:[#allocation2 + $0x37]] }
  0x3b   :  { %v161_v13 = vmul.f32 %v894_v55, %v160_v11  ;;  %v163_v14 = vstv %s634_s21  ;;  %s640_s26 = sld [smem:[#allocation2 + $0x1a]] }
  0x3c   :  { %v166_v15 = vstv %s635_s22  ;;  %s918_s27 = sld [smem:[#allocation2 + $0x3e]]  ;;  %v145_v20 = vadd.f32 %v144_v10, %v141_v9 }
  0x3d   :  { %v920_v16 = vpop.eup %752  ;;  %v164_v17 = vadd.f32 %v163_v14, %v161_v13  ;;  %v167_v18 = vmul.f32 %v905_v4, %v166_v15  ;;  %v170_v19 = vstv %s636_s23  ;;  %s642_s28 = sld [smem:[#allocation2 + $0x20]] }
  0x3e   :  { %v148_v21 = vmul.f32 %v920_v16, %v147_v12  ;;  %v171_v22 = vmul.f32 %v909_v8, %v170_v19  ;;  %v174_v23 = vstv %s637_s24  ;;  %s643_s29 = sld [smem:[#allocation2 + $0x26]] }
  0x3f   :  { %v168_v25 = vadd.f32 %v167_v18, %v164_v17  ;;  %v175_v26 = vmul.f32 %v920_v16, %v174_v23  ;;  %s644_s30 = sld [smem:[#allocation2 + $0x2c]]  ;;  %v178_v27 = vstv %s911_s25 }
  0x40   :  { %s928_s3 = sld [smem:[#allocation2 + $0x32]]  ;;  %v149_v31 = vadd.f32 %v148_v21, %v145_v20  ;;  %v182_v39 = vstv %s914_s1 }
  0x41   :  { %v930_v28 = vpop.eup %754  ;;  %v172_v29 = vadd.f32 %v171_v22, %v168_v25  ;;  %v187_v30 = vstv %s640_s26  ;;  %s932_s4 = sld [smem:[#allocation2 + $0x38]] }
  0x42   :  { %v152_v32 = vmul.f32 %v930_v28, %v151_v24  ;;  %v188_v33 = vmul.f32 %v894_v55, %v187_v30  ;;  %v190_v34 = vstv %s918_s27  ;;  %s937_s5 = sld [smem:[#allocation2 + $0x1b]]  ;;  %v179_v37 = vmul.f32 %v930_v28, %v178_v27 }
  0x43   :  { %v176_v36 = vadd.f32 %v175_v26, %v172_v29  ;;  %v193_v38 = vstv %s642_s28  ;;  %s941_s6 = sld [smem:[#allocation2 + $0x3f]] }
  0x44   :  { %v191_v40 = vadd.f32 %v190_v34, %v188_v33  ;;  %v194_v41 = vmul.f32 %v905_v4, %v193_v38  ;;  %v197_v42 = vstv %s643_s29  ;;  %s649_s7 = sld [smem:[#allocation2 + $0x21]]  ;;  %v153_v46 = vadd.f32 %v152_v32, %v149_v31 }
  0x45   :  { %v945_v43 = vpop.eup %756  ;;  %v198_v44 = vmul.f32 %v909_v8, %v197_v42  ;;  %v201_v45 = vstv %s644_s30  ;;  %s650_s8 = sld [smem:[#allocation2 + $0x27]]  ;;  %v180_v50 = vadd.f32 %v179_v37, %v176_v36 }
  0x46   :  { %v156_v47 = vmul.f32 %v945_v43, %v155_v35  ;;  %v195_v48 = vadd.f32 %v194_v41, %v191_v40  ;;  %v202_v49 = vmul.f32 %v920_v16, %v201_v45  ;;  %s950_s9 = sld [smem:[#allocation2 + $0x2d]]  ;;  %v183_v51 = vmul.f32 %v945_v43, %v182_v39 }
  0x47   :  { %v205_v52 = vstv %s928_s3  ;;  %s954_s10 = sld [smem:[#allocation2 + $0x33]]  ;;  %v209_v56 = vstv %s932_s4 }
  0x48   :  { %v199_v53 = vadd.f32 %v198_v44, %v195_v48  ;;  %v206_v54 = vmul.f32 %v930_v28, %v205_v52  ;;  %s958_s11 = sld [smem:[#allocation2 + $0x39]]  ;;  %v214_v57 = vstv %s937_s5  ;;  %v157_v59 = vadd.f32 %v156_v47, %v153_v46 }
  0x49   :  { %v217_v58 = vstv %s941_s6  ;;  %s654_s12 = sld [smem:[#allocation2 + $0x1c]]  ;;  %v215_v61 = vmul.f32 %v894_v55, %v214_v57  ;;  %v184_v63 = vadd.f32 %v183_v51, %v180_v50  ;;  %v210_v0 = vmul.f32 %v945_v43, %v209_v56 }
  0x4a   :  { %v203_v60 = vadd.f32 %v202_v49, %v199_v53  ;;  %v220_v62 = vstv %s649_s7  ;;  %s963_s13 = sld [smem:[#allocation2 + $0x40]]  ;;  %758 = vtanh.f32 %v157_v59 }
  0x4b   :  { %v221_v2 = vmul.f32 %v905_v4, %v220_v62  ;;  %v224_v5 = vstv %s650_s8  ;;  %s656_s14 = sld [smem:[#allocation2 + $0x22]]  ;;  %v218_v6 = vadd.f32 %v217_v58, %v215_v61  ;;  %760 = vtanh.f32 %v184_v63 }
  0x4c   :  { %v207_v1 = vadd.f32 %v206_v54, %v203_v60  ;;  %v225_v7 = vmul.f32 %v909_v8, %v224_v5  ;;  %v228_v3 = vstv %s950_s9  ;;  %s657_s15 = sld [smem:[#allocation2 + $0x28]] }
  0x4d   :  { %v232_v9 = vstv %s954_s10  ;;  %s658_s16 = sld [smem:[#allocation2 + $0x2e]]  ;;  %v222_v10 = vadd.f32 %v221_v2, %v218_v6  ;;  %v229_v11 = vmul.f32 %v920_v16, %v228_v3 }
  0x4e   :  { %v236_v12 = vstv %s958_s11  ;;  %s972_s17 = sld [smem:[#allocation2 + $0x34]]  ;;  %v211_v13 = vadd.f32 %v210_v0, %v207_v1  ;;  %v233_v17 = vmul.f32 %v930_v28, %v232_v9 }
  0x4f   :  { %v241_v14 = vstv %s654_s12  ;;  %s974_s18 = sld [smem:[#allocation2 + $0x3a]]  ;;  %v226_v15 = vadd.f32 %v225_v7, %v222_v10  ;;  %v237_v20 = vmul.f32 %v945_v43, %v236_v12 }
  0x50   :  { %v242_v18 = vmul.f32 %v894_v55, %v241_v14  ;;  %v244_v19 = vstv %s963_s13  ;;  %s661_s19 = sld [smem:[#allocation2 + $0x1d]]  ;;  %762 = vtanh.f32 %v211_v13 }
  0x51   :  { %v247_v21 = vstv %s656_s14  ;;  %s662_s0 = sld [smem:[#allocation2 + $0x41]]  ;;  %v230_v22 = vadd.f32 %v229_v11, %v226_v15 }
  0x52   :  { %v245_v23 = vadd.f32 %v244_v19, %v242_v18  ;;  %v248_v24 = vmul.f32 %v905_v4, %v247_v21  ;;  %v251_v25 = vstv %s657_s15  ;;  %s663_s20 = sld [smem:[#allocation2 + $0x23]] }
  0x53   :  { %v252_v26 = vmul.f32 %v909_v8, %v251_v25  ;;  %v255_v27 = vstv %s658_s16  ;;  %s664_s21 = sld [smem:[#allocation2 + $0x29]]  ;;  %v234_v29 = vadd.f32 %v233_v17, %v230_v22 }
  0x54   :  { %v249_v30 = vadd.f32 %v248_v24, %v245_v23  ;;  %v256_v31 = vmul.f32 %v920_v16, %v255_v27  ;;  %v259_v32 = vstv %s972_s17  ;;  %s665_s22 = sld [smem:[#allocation2 + $0x2f]] }
  0x55   :  { %v263_v33 = vstv %s974_s18  ;;  %s985_s23 = sld [smem:[#allocation2 + $0x35]]  ;;  %v238_v34 = vadd.f32 %v237_v20, %v234_v29  ;;  %v260_v36 = vmul.f32 %v930_v28, %v259_v32 }
  0x56   :  { %v253_v35 = vadd.f32 %v252_v26, %v249_v30  ;;  %v268_v37 = vstv %s661_s19  ;;  %s988_s24 = sld [smem:[#allocation2 + $0x3b]]  ;;  %v264_v41 = vmul.f32 %v945_v43, %v263_v33 }
  0x57   :  { %v269_v38 = vmul.f32 %v894_v55, %v268_v37  ;;  %v271_v39 = vstv %s662_s0  ;;  %s668_s25 = sld [smem:[#allocation2 + $0x42]]  ;;  %764 = vtanh.f32 %v238_v34  ;;  %v998_v49 = vpop.eup %758 }
  0x58   :  { %v257_v40 = vadd.f32 %v256_v31, %v253_v35  ;;  %v274_v42 = vstv %s663_s20  ;;  %s992_s1 = sld [smem:[#allocation2 + $0x66]]  ;;  %v1004_v53 = vpop.eup %760 }
  0x59   :  { %v272_v44 = vadd.f32 %v271_v39, %v269_v38  ;;  %v275_v45 = vmul.f32 %v905_v4, %v274_v42  ;;  %v278_v46 = vstv %s664_s21  ;;  %s670_s26 = sld [smem:[#allocation2 + $0x48]] }
  0x5a   :  { %v261_v47 = vadd.f32 %v260_v36, %v257_v40  ;;  %v279_v48 = vmul.f32 %v909_v8, %v278_v46  ;;  %v282_v55 = vstv %s665_s22  ;;  %s996_s27 = sld [smem:[#allocation2 + $0x4e]] }
  0x5b   :  { %v276_v50 = vadd.f32 %v275_v45, %v272_v44  ;;  %v283_v51 = vmul.f32 %v920_v16, %v282_v55  ;;  %v286_v52 = vstv %s985_s23  ;;  %s1002_s28 = sld [smem:[#allocation2 + $0x54]] }
  0x5c   :  { %v265_v4 = vadd.f32 %v264_v41, %v261_v47  ;;  %v290_v54 = vstv %s988_s24  ;;  %s1007_s29 = sld [smem:[#allocation2 + $0x5a]]  ;;  %v287_v8 = vmul.f32 %v930_v28, %v286_v52 }
  0x5d   :  { %v280_v56 = vadd.f32 %v279_v48, %v276_v50  ;;  %v295_v57 = vstv %s668_s25  ;;  %s1010_s30 = sld [smem:[#allocation2 + $0x60]]  ;;  %v291_v60 = vmul.f32 %v945_v43, %v290_v54  ;;  %v1015_v62 = vpop.eup %762 }
  0x5e   :  { %766 = vtanh.f32 %v265_v4  ;;  %v296_v58 = vmul.f32 %v998_v49, %v295_v57  ;;  %v298_v16 = vstv %s992_s1  ;;  %s675_s3 = sld [smem:[#allocation2 + $0x43]] }
  0x5f   :  { %v284_v59 = vadd.f32 %v283_v51, %v280_v56  ;;  %v301_v61 = vstv %s670_s26  ;;  %s676_s4 = sld [smem:[#allocation2 + $0x67]] }
  0x60   :  { %v299_v63 = vadd.f32 %v298_v16, %v296_v58  ;;  %v302_v28 = vmul.f32 %v1004_v53, %v301_v61  ;;  %s677_s5 = sld [smem:[#allocation2 + $0x49]]  ;;  %v305_v2 = vstv %s996_s27 }
  0x61   :  { %v288_v0 = vadd.f32 %v287_v8, %v284_v59  ;;  %s678_s6 = sld [smem:[#allocation2 + $0x4f]]  ;;  %v306_v6 = vmul.f32 %v1015_v62, %v305_v2  ;;  %v309_v3 = vstv %s1002_s28 }
  0x62   :  { %s679_s7 = sld [smem:[#allocation2 + $0x55]]  ;;  %v303_v1 = vadd.f32 %v302_v28, %v299_v63  ;;  %v313_v22 = vstv %s1007_s29 }
  0x63   :  { %v292_v5 = vadd.f32 %v291_v60, %v288_v0  ;;  %s1019_s8 = sld [smem:[#allocation2 + $0x5b]]  ;;  %v317_v38 = vstv %s1010_s30 }
  0x64   :  { %v322_v43 = vstv %s675_s3  ;;  %s1022_s9 = sld [smem:[#allocation2 + $0x61]]  ;;  %v1024_v7 = vpop.eup %764  ;;  %v307_v15 = vadd.f32 %v306_v6, %v303_v1 }
  0x65   :  { %768 = vtanh.f32 %v292_v5  ;;  %v323_v9 = vmul.f32 %v998_v49, %v322_v43  ;;  %v325_v10 = vstv %s676_s4  ;;  %s682_s10 = sld [smem:[#allocation2 + $0x44]]  ;;  %v310_v17 = vmul.f32 %v1024_v7, %v309_v3 }
  0x66   :  { %v328_v11 = vstv %s677_s5  ;;  %s683_s11 = sld [smem:[#allocation2 + $0x68]] }
  0x67   :  { %v326_v12 = vadd.f32 %v325_v10, %v323_v9  ;;  %v329_v13 = vmul.f32 %v1004_v53, %v328_v11  ;;  %v332_v14 = vstv %s678_s6  ;;  %s684_s12 = sld [smem:[#allocation2 + $0x4a]]  ;;  %v311_v27 = vadd.f32 %v310_v17, %v307_v15 }
  0x68   :  { %v333_v18 = vmul.f32 %v1015_v62, %v332_v14  ;;  %v336_v19 = vstv %s679_s7  ;;  %s685_s13 = sld [smem:[#allocation2 + $0x50]] }
  0x69   :  { %v330_v20 = vadd.f32 %v329_v13, %v326_v12  ;;  %v337_v21 = vmul.f32 %v1024_v7, %v336_v19  ;;  %s686_s14 = sld [smem:[#allocation2 + $0x56]]  ;;  %v340_v23 = vstv %s1019_s8 }
  0x6a   :  { %s1034_s15 = sld [smem:[#allocation2 + $0x5c]]  ;;  %v344_v41 = vstv %s1022_s9 }
  0x6b   :  { %v1036_v24 = vpop.eup %766  ;;  %v334_v25 = vadd.f32 %v333_v18, %v330_v20  ;;  %v349_v26 = vstv %s682_s10  ;;  %s1038_s16 = sld [smem:[#allocation2 + $0x62]] }
  0x6c   :  { %v350_v29 = vmul.f32 %v998_v49, %v349_v26  ;;  %v352_v30 = vstv %s683_s11  ;;  %s689_s17 = sld [smem:[#allocation2 + $0x45]]  ;;  %v314_v31 = vmul.f32 %v1036_v24, %v313_v22  ;;  %v341_v33 = vmul.f32 %v1036_v24, %v340_v23 }
  0x6d   :  { %v338_v32 = vadd.f32 %v337_v21, %v334_v25  ;;  %v355_v34 = vstv %s684_s12  ;;  %s1043_s18 = sld [smem:[#allocation2 + $0x69]] }
  0x6e   :  { %v353_v35 = vadd.f32 %v352_v30, %v350_v29  ;;  %v356_v36 = vmul.f32 %v1004_v53, %v355_v34  ;;  %v359_v37 = vstv %s685_s13  ;;  %s691_s19 = sld [smem:[#allocation2 + $0x4b]]  ;;  %v315_v46 = vadd.f32 %v314_v31, %v311_v27 }
  0x6f   :  { %v360_v39 = vmul.f32 %v1015_v62, %v359_v37  ;;  %v363_v40 = vstv %s686_s14  ;;  %s1048_s0 = sld [smem:[#allocation2 + $0x51]]  ;;  %v342_v47 = vadd.f32 %v341_v33, %v338_v32 }
  0x70   :  { %v357_v42 = vadd.f32 %v356_v36, %v353_v35  ;;  %v364_v44 = vmul.f32 %v1024_v7, %v363_v40  ;;  %v367_v45 = vstv %s1034_s15  ;;  %s693_s20 = sld [smem:[#allocation2 + $0x57]] }
  0x71   :  { %s1053_s21 = sld [smem:[#allocation2 + $0x5d]]  ;;  %v368_v50 = vmul.f32 %v1036_v24, %v367_v45  ;;  %v371_v51 = vstv %s1038_s16 }
  0x72   :  { %v1055_v48 = vpop.eup %768  ;;  %v361_v55 = vadd.f32 %v360_v39, %v357_v42  ;;  %v376_v52 = vstv %s689_s17  ;;  %s1059_s22 = sld [smem:[#allocation2 + $0x63]] }
  0x73   :  { %v318_v4 = vmul.f32 %v1055_v48, %v317_v38  ;;  %v345_v54 = vmul.f32 %v1055_v48, %v344_v41  ;;  %v377_v56 = vmul.f32 %v998_v49, %v376_v52  ;;  %s696_s23 = sld [smem:[#allocation2 + $0x46]]  ;;  %v379_v57 = vstv %s1043_s18 }
  0x74   :  { %v365_v8 = vadd.f32 %v364_v44, %v361_v55  ;;  %v382_v58 = vstv %s691_s19  ;;  %s1065_s24 = sld [smem:[#allocation2 + $0x6a]]  ;;  %v372_v59 = vmul.f32 %v1055_v48, %v371_v51 }
  0x75   :  { %v319_v16 = vadd.f32 %v318_v4, %v315_v46  ;;  %v380_v60 = vadd.f32 %v379_v57, %v377_v56  ;;  %v383_v61 = vmul.f32 %v1004_v53, %v382_v58  ;;  %s698_s25 = sld [smem:[#allocation2 + $0x4c]]  ;;  %v346_v63 = vadd.f32 %v345_v54, %v342_v47 }
  0x76   :  { %v369_v28 = vadd.f32 %v368_v50, %v365_v8  ;;  %v386_v0 = vstv %s1048_s0  ;;  %v390_v2 = vstv %s693_s20  ;;  %s699_s1 = sld [smem:[#allocation2 + $0x52]] }
  0x77   :  { %v384_v5 = vadd.f32 %v383_v61, %v380_v60  ;;  %v387_v1 = vmul.f32 %v1015_v62, %v386_v0  ;;  %v391_v6 = vmul.f32 %v1024_v7, %v390_v2  ;;  %s700_s26 = sld [smem:[#allocation2 + $0x58]]  ;;  %770 = vtanh.f32 %v319_v16 }
  0x78   :  { %v394_v43 = vstv %s1053_s21  ;;  %v398_v3 = vstv %s1059_s22  ;;  %s1074_s27 = sld [smem:[#allocation2 + $0x5e]]  ;;  %772 = vtanh.f32 %v346_v63  ;;  %v373_v12 = vadd.f32 %v372_v59, %v369_v28 }
  0x79   :  { %v388_v9 = vadd.f32 %v387_v1, %v384_v5  ;;  %v395_v10 = vmul.f32 %v1036_v24, %v394_v43  ;;  %v403_v11 = vstv %s696_s23  ;;  %s1077_s28 = sld [smem:[#allocation2 + $0x64]]  ;;  %v399_v17 = vmul.f32 %v1055_v48, %v398_v3 }
  0x7a   :  { %v404_v13 = vmul.f32 %v998_v49, %v403_v11  ;;  %v406_v14 = vstv %s1065_s24  ;;  %s703_s29 = sld [smem:[#allocation2 + $0x47]]  ;;  %774 = vtanh.f32 %v373_v12 }
  0x7b   :  { %v392_v15 = vadd.f32 %v391_v6, %v388_v9  ;;  %v409_v18 = vstv %s698_s25  ;;  %s704_s30 = sld [smem:[#allocation2 + $0x6b]] }
  0x7c   :  { %v407_v19 = vadd.f32 %v406_v14, %v404_v13  ;;  %v410_v20 = vmul.f32 %v1004_v53, %v409_v18  ;;  %v413_v21 = vstv %s699_s1  ;;  %s705_s3 = sld [smem:[#allocation2 + $0x4d]] }
  0x7d   :  { %v396_v22 = vadd.f32 %v395_v10, %v392_v15  ;;  %v414_v23 = vmul.f32 %v1015_v62, %v413_v21  ;;  %v417_v25 = vstv %s700_s26  ;;  %s706_s4 = sld [smem:[#allocation2 + $0x53]] }
  0x7e   :  { %v411_v26 = vadd.f32 %v410_v20, %v407_v19  ;;  %v418_v27 = vmul.f32 %v1024_v7, %v417_v25  ;;  %v421_v29 = vstv %s1074_s27  ;;  %s707_s5 = sld [smem:[#allocation2 + $0x59]] }
  0x7f   :  { %v400_v30 = vadd.f32 %v399_v17, %v396_v22  ;;  %v425_v31 = vstv %s1077_s28  ;;  %s1087_s6 = sld [smem:[#allocation2 + $0x5f]]  ;;  %v422_v33 = vmul.f32 %v1036_v24, %v421_v29 }
  0x80   :  { %v415_v32 = vadd.f32 %v414_v23, %v411_v26  ;;  %v430_v34 = vstv %s703_s29  ;;  %s1090_s7 = sld [smem:[#allocation2 + $0x65]]  ;;  %v426_v38 = vmul.f32 %v1055_v48, %v425_v31 }
  0x81   :  { %v431_v35 = vmul.f32 %v998_v49, %v430_v34  ;;  %v433_v36 = vstv %s704_s30  ;;  %s710_s8 = sld [smem:[#allocation2 + $0x6c]]  ;;  %776 = vtanh.f32 %v400_v30 }
  0x82   :  { %v419_v37 = vadd.f32 %v418_v27, %v415_v32  ;;  %v436_v39 = vstv %s705_s3  ;;  %s711_s9 = sld [smem:[#allocation2 + $0x7e]] }
  0x83   :  { %v434_v40 = vadd.f32 %v433_v36, %v431_v35  ;;  %v437_v41 = vmul.f32 %v1004_v53, %v436_v39  ;;  %v440_v42 = vstv %s706_s4  ;;  %s712_s10 = sld [smem:[#allocation2 + $0x6f]] }
  0x84   :  { %v423_v44 = vadd.f32 %v422_v33, %v419_v37  ;;  %v441_v45 = vmul.f32 %v1015_v62, %v440_v42  ;;  %v444_v46 = vstv %s707_s5  ;;  %s1096_s11 = sld [smem:[#allocation2 + $0x72]]  ;;  %v1098_v49 = vpop.eup %770 }
  0x85   :  { %v438_v47 = vadd.f32 %v437_v41, %v434_v40  ;;  %v445_v55 = vmul.f32 %v1024_v7, %v444_v46  ;;  %v448_v50 = vstv %s1087_s6  ;;  %s1102_s12 = sld [smem:[#allocation2 + $0x75]]  ;;  %v773_v53 = vpop.eup %772 }
  0x86   :  { %v427_v51 = vadd.f32 %v426_v38, %v423_v44  ;;  %v452_v52 = vstv %s1090_s7  ;;  %s1105_s13 = sld [smem:[#allocation2 + $0x78]]  ;;  %v449_v54 = vmul.f32 %v1036_v24, %v448_v50 }
  0x87   :  { %v442_v4 = vadd.f32 %v441_v45, %v438_v47  ;;  %v457_v62 = vstv %s710_s8  ;;  %s1108_s14 = sld [smem:[#allocation2 + $0x7b]]  ;;  %v453_v57 = vmul.f32 %v1055_v48, %v452_v52  ;;  %v775_v60 = vpop.eup %774 }
  0x88   :  { %778 = vtanh.f32 %v427_v51  ;;  %v458_v56 = vmul.f32 %v1098_v49, %v457_v62  ;;  %v460_v8 = vstv %s711_s9  ;;  %s717_s15 = sld [smem:[#allocation2 + $0x6d]]  ;;  %s848_s9 = smov [#allocation7]  }
  0x89   :  { %v446_v7 = vadd.f32 %v445_v55, %v442_v4  ;;  %v463_v58 = vstv %s712_s10  ;;  %s718_s16 = sld [smem:[#allocation2 + $0x7f]]  ;;  %s593_s10 = sshll.u32 %s848_s9, 4  ;;  %s594_s10 = int_to_ptr.vmem [resolvable:$true] %s593_s10 }
  0x8a   :  { %v461_v16 = vadd.f32 %v460_v8, %v458_v56  ;;  %v464_v59 = vmul.f32 %v773_v53, %v463_v58  ;;  %s719_s17 = sld [smem:[#allocation2 + $0x70]]  ;;  %v467_v61 = vstv %s1096_s11  ;;  %s818_s11 = scalar_lea.vmem %s594_s10, 16 }
  0x8b   :  { %v450_v24 = vadd.f32 %v449_v54, %v446_v7  ;;  %s720_s18 = sld [smem:[#allocation2 + $0x73]]  ;;  %v468_v0 = vmul.f32 %v775_v60, %v467_v61  ;;  %v471_v5 = vstv %s1102_s12  ;;  %p819_p5 = scmp.ne.s32.totalorder %s594_s10, %s818_s11 }
  0x8c   :  { %s721_s19 = sld [smem:[#allocation2 + $0x76]]  ;;  %v465_v28 = vadd.f32 %v464_v59, %v461_v16  ;;  %v475_v18 = vstv %s1105_s13  ;;  %s822_s12 = scalar_lea.vmem %s594_s10, 32 }
  0x8d   :  { %v454_v63 = vadd.f32 %v453_v57, %v450_v24  ;;  %s1113_s0 = sld [smem:[#allocation2 + $0x79]]  ;;  %v479_v35 = vstv %s1108_s14  ;;  %p823_p6 = scmp.lt.s32.totalorder %s594_s10, %s594_s10 }
  0x8e   :  { %v484_v2 = vstv %s717_s15  ;;  %s1115_s20 = sld [smem:[#allocation2 + $0x7c]]  ;;  %v777_v48 = vpop.eup %776  ;;  %v469_v11 = vadd.f32 %v468_v0, %v465_v28  ;;  %p824_p7 = scmp.lt.s32.totalorder %s822_s12, %s818_s11 }
  0x8f   :  { %780 = vtanh.f32 %v454_v63  ;;  %v485_v1 = vmul.f32 %v1098_v49, %v484_v2  ;;  %v487_v6 = vstv %s718_s16  ;;  %s724_s21 = sld [smem:[#allocation2 + $0x6e]]  ;;  %v472_v12 = vmul.f32 %v777_v48, %v471_v5 }
  0x90   :  { %v490_v43 = vstv %s719_s17  ;;  %s725_s22 = sld [smem:[#allocation2 + $0x80]]  ;;  %p825_p8 = por %p824_p7, %p823_p6 }
  0x91   :  { %v488_v3 = vadd.f32 %v487_v6, %v485_v1  ;;  %v491_v9 = vmul.f32 %v773_v53, %v490_v43  ;;  %v494_v10 = vstv %s720_s18  ;;  %s726_s23 = sld [smem:[#allocation2 + $0x71]]  ;;  %v473_v23 = vadd.f32 %v472_v12, %v469_v11 }
  0x92   :  { %v495_v13 = vmul.f32 %v775_v60, %v494_v10  ;;  %v498_v14 = vstv %s721_s19  ;;  %s727_s24 = sld [smem:[#allocation2 + $0x74]]  ;;  %p826_p9 = pnand %p825_p8, %p819_p5 }
  0x93   :  { %v492_v15 = vadd.f32 %v491_v9, %v488_v3  ;;  %v499_v17 = vmul.f32 %v777_v48, %v498_v14  ;;  %s728_s25 = sld [smem:[#allocation2 + $0x77]]  ;;  %v502_v19 = vstv %s1113_s0 }
  0x94   :  { %s729_s1 = sld [smem:[#allocation2 + $0x7a]]  ;;  %v506_v38 = vstv %s1115_s20 }
  0x95   :  { %v779_v20 = vpop.eup %778  ;;  %v496_v21 = vadd.f32 %v495_v13, %v492_v15  ;;  %v511_v22 = vstv %s724_s21  ;;  %s730_s26 = sld [smem:[#allocation2 + $0x7d]] }
  0x96   :  { %v512_v25 = vmul.f32 %v1098_v49, %v511_v22  ;;  %v514_v26 = vstv %s725_s22  ;;  %v476_v27 = vmul.f32 %v779_v20, %v475_v18  ;;  %v503_v30 = vmul.f32 %v779_v20, %v502_v19  ;;  %s731_s27 = sld [smem:[#allocation2 + $0x81]] }
  0x97   :  { %v500_v29 = vadd.f32 %v499_v17, %v496_v21  ;;  %v517_v31 = vstv %s726_s23  ;;  %s732_s28 = sld [smem:[#allocation2 + $0x84]] }
  0x98   :  { %v515_v32 = vadd.f32 %v514_v26, %v512_v25  ;;  %v518_v33 = vmul.f32 %v773_v53, %v517_v31  ;;  %v521_v34 = vstv %s727_s24  ;;  %v477_v42 = vadd.f32 %v476_v27, %v473_v23  ;;  %s733_s29 = sld [smem:[#allocation2 + $0x82]] }
  0x99   :  { %v522_v36 = vmul.f32 %v775_v60, %v521_v34  ;;  %v525_v37 = vstv %s728_s25  ;;  %v504_v44 = vadd.f32 %v503_v30, %v500_v29  ;;  %s734_s30 = sld [smem:[#allocation2 + $0x85]] }
  0x9a   :  { %v519_v39 = vadd.f32 %v518_v33, %v515_v32  ;;  %v526_v40 = vmul.f32 %v777_v48, %v525_v37  ;;  %v529_v41 = vstv %s729_s1  ;;  %s735_s3 = sld [smem:[#allocation2 + $0x83]] }
  0x9b   :  { %v533_v45 = vstv %s730_s26  ;;  %v530_v47 = vmul.f32 %v779_v20, %v529_v41  ;;  %s736_s4 = sld [smem:[#allocation2 + $0x86]] }
  0x9c   :  { %v781_v46 = vpop.eup %780  ;;  %v523_v49 = vadd.f32 %v522_v36, %v519_v39  ;;  %s737_s5 = sld [smem:[#allocation2 + $0x87]]  ;;  %v553_v6 = vstv %s731_s27 }
  0x9d   :  { %v480_v55 = vmul.f32 %v781_v46, %v479_v35  ;;  %v507_v50 = vmul.f32 %v781_v46, %v506_v38  ;;  %v534_v52 = vmul.f32 %v781_v46, %v533_v45  ;;  %s738_s6 = sld [smem:[#allocation2 + $0x88]]  ;;  %v556_v12 = vstv %s732_s28 }
  0x9e   :  { %v527_v51 = vadd.f32 %v526_v40, %v523_v49  ;;  %s739_s7 = sld [smem:[#allocation2 + $0x89]]  ;;  %v560_v43 = vstv %s733_s29 }
  0x9f   :  { %v481_v4 = vadd.f32 %v480_v55, %v477_v42  ;;  %v508_v53 = vadd.f32 %v507_v50, %v504_v44  ;;  %v563_v13 = vstv %s734_s30  ;;  %s740_s8 = sld [smem:[#allocation2 + $0x8a]] }
  0xa0   :  { %v531_v54 = vadd.f32 %v530_v47, %v527_v51  ;;  %v567_v3 = vstv %s735_s3 }
  0xa1   :  { %782 = vtanh.f32 %v481_v4  ;;  %v570_v14 = vstv %s736_s4 }
  0xa2   :  { %784 = vtanh.f32 %v508_v53  ;;  %v535_v62 = vadd.f32 %v534_v52, %v531_v54  ;;  %v573_v19 = vstv %s737_s5 }
  0xa3   :  { %v576_v20 = vstv %s738_s6 }
  0xa4   :  { %786 = vtanh.f32 %v535_v62  ;;  %v580_v21 = vstv %s739_s7 }
  0xa5   :  { %v584_v31 = vstv %s740_s8 }
  0xae   :  { %v783_v56 = vpop.eup %782 }
  0xaf   :  { %v785_v8 = vpop.eup %784 }
  0xb0   :  { %v537_v7 = vadd.f32 %v785_v8, %v783_v56 }
  0xb1   :  { %v787_v57 = vpop.eup %786 }
  0xb2   :  { %v538_v58 = vadd.f32 %v787_v57, %v537_v7 }
  0xb4   :  { %v539_v16 = vmul.f32 0.33333334, %v538_v58 }
  0xb6   :  { %v540_v59 = vsub.f32 %v783_v56, %v539_v16  ;;  %v541_v60 = vsub.f32 %v785_v8, %v539_v16  ;;  %v542_v24 = vsub.f32 %v787_v57, %v539_v16 }
  0xb8   :  { %v543_v61 = vmul.f32 %v540_v59, %v540_v59  ;;  %v544_v63 = vmul.f32 %v541_v60, %v541_v60  ;;  %v546_v28 = vmul.f32 %v542_v24, %v542_v24 }
  0xba   :  { %v545_v0 = vadd.f32 %v544_v63, %v543_v61 }
  0xbc   :  { %v547_v2 = vadd.f32 %v546_v28, %v545_v0 }
  0xbe   :  { %v548_v48 = vmul.f32 0.33333334, %v547_v2 }
  0xc0   :  { %v549_v5 = vadd.f32 1e-05, %v548_v48 }
  0xc2   :  { %788 = vrsqrt.f32 %v549_v5 }
  0xcf   :  { %v789_v1 = vpop.eup %788 }
  0xd0   :  { %v551_v9 = vmul.f32 %v789_v1, %v540_v59  ;;  %v558_v10 = vmul.f32 %v789_v1, %v541_v60  ;;  %v565_v11 = vmul.f32 %v789_v1, %v542_v24 }
  0xd2   :  { %v554_v15 = vmul.f32 %v553_v6, %v551_v9  ;;  %v561_v17 = vmul.f32 %v560_v43, %v558_v10  ;;  %v568_v18 = vmul.f32 %v567_v3, %v565_v11 }
  0xd4   :  { %v557_v22 = vadd.f32 %v556_v12, %v554_v15  ;;  %v564_v23 = vadd.f32 %v563_v13, %v561_v17  ;;  %v571_v25 = vadd.f32 %v570_v14, %v568_v18 }
  0xd6   :  { %v574_v26 = vmul.f32 %v573_v19, %v557_v22  ;;  %v577_v27 = vmul.f32 %v576_v20, %v564_v23  ;;  %v581_v29 = vmul.f32 %v580_v21, %v571_v25 }
  0xd8   :  { %v578_v30 = vadd.f32 %v577_v27, %v574_v26 }
  0xda   :  { %v582_v32 = vadd.f32 %v581_v29, %v578_v30 }
  0xdc   :  { %v585_v33 = vadd.f32 %v584_v31, %v582_v32 }
  0xde   :  { %586 = vst [vmem:[#allocation7] sm:$0x1] %v585_v33 }
  0xdf   :  { %829 = shalt.err (!%p826_p9)
}
  0xe0   :  { %596 = dma.vmem_to_hbm [thread:$0]  %s594_s10, 16, %s1129_s2, [#allocation4]  }
  0xe1   :  { %842 = dma.done.wait [#allocation4], 16  }
  0xe2   :  { %843 = vsyncadd [#allocation4], 4294967280 }
  0xe3   :  { %600 = vsyncpa [#allocation3], 1 }
  0xe4   :  { %601 = vsyncpa [#allocation4], 1 }
  0xe5   :  { %602 = vsyncpa [#allocation5], 1 }

</bundles_post_ra>
